<compile_context>
chip_gen: v7x
topology: tpu7x:2x2x1
jax: 0.10.0
libtpu: 0.0.40
codegen_flags: <defaults>
</compile_context>

<pallas_src>
import jax
import jax.numpy as jnp
from jax.experimental import pallas as pl
from jax.experimental.pallas import tpu as pltpu


# ----------------------------------------------------------------------------
# Fused kernel
# ----------------------------------------------------------------------------
def _make_fused_kernel(num_layers, T, Bp, H):
    """Build the fused LSTM(+FC) kernel.

    Kernel ref layout (in order):
      x_ref                   : (T*Bp, I)     time-major flattened input
      per layer (3 refs each) : wih (in, 4H), whh (H, 4H), b (1, 4H)
      fc_w_ref                : (1, H)
      fc_b_ref                : (1, 1)
      out_ref                 : (Bp, 1)
      hseq_ref (VMEM scratch) : (T, Bp, H)    current layer's hidden sequence
      xp_ref   (VMEM scratch) : (T, Bp, 4H)   hoisted fused-gate input projection
    """
    G = 4 * H  # fused gate width (lanes)

    def kernel(*refs):
        x_ref = refs[0]
        layer_refs = [(refs[1 + 3 * l], refs[2 + 3 * l], refs[3 + 3 * l])
                      for l in range(num_layers)]
        fc_w_ref = refs[1 + 3 * num_layers]
        fc_b_ref = refs[2 + 3 * num_layers]
        out_ref = refs[3 + 3 * num_layers]
        hseq_ref = refs[4 + 3 * num_layers]
        xp_ref = refs[5 + 3 * num_layers]

        cur_flat = x_ref[...]                       # (T*Bp, in), time-major rows
        h_final = None

        for layer in range(num_layers):
            wih_ref, whh_ref, b_ref = layer_refs[layer]
            last = layer == num_layers - 1

            # ---- Hoisted input projection: ONE (T*Bp, in) @ (in, 4H) matmul,
            #      bias fused. Bp % 8 == 0 makes the reshape layout-trivial.
            xp_ref[...] = (
                jnp.dot(cur_flat, wih_ref[...],
                        preferred_element_type=jnp.float32)
                + b_ref[...]
            ).reshape(T, Bp, G)

            # ---- Serial recurrence over time (VMEM-resident state, unrolled).
            #      One fused (Bp,H)@(H,4H) matmul + 2 EUP passes per step.
            def step(t, carry, whh_ref=whh_ref, write_seq=not last):
                h, c = carry
                z = xp_ref[t] + jnp.dot(h, whh_ref[...],
                                        preferred_element_type=jnp.float32)  # (Bp,4H)
                s = jax.nn.sigmoid(z)                 # one EUP pass over all 4H lanes
                i_g = s[:, 0 * H:1 * H]               # static 32-lane slices (no
                f_g = s[:, 1 * H:2 * H]               # (Bp,4,H) reshape / relayout)
                o_g = s[:, 3 * H:4 * H]
                g_g = jnp.tanh(z[:, 2 * H:3 * H])     # tanh only on the g-gate lanes
                c_n = f_g * c + i_g * g_g
                h_n = o_g * jnp.tanh(c_n)
                if write_seq:                         # last layer: no per-step stores
                    hseq_ref[t] = h_n
                return h_n, c_n

            init = (jnp.zeros((Bp, H), jnp.float32),
                    jnp.zeros((Bp, H), jnp.float32))
            h_final, _ = jax.lax.fori_loop(0, T, step, init, unroll=True)

            if not last:
                # Next layer's time-major flattened input (trivial reshape).
                cur_flat = hseq_ref[...].reshape(T * Bp, H)

        # ---- Fused final Linear on the last timestep's hidden state:
        #      VPU multiply + lane reduction instead of an N=1 MXU matmul.
        out_ref[...] = (jnp.sum(h_final * fc_w_ref[...], axis=-1, keepdims=True)
                        + fc_b_ref[...])

    return kernel


def _fused_forward(x_tm_flat, layers, fc_w, fc_b, T, Bp):
    """x_tm_flat: (T*Bp, I) time-major flattened, batch padded to Bp (mult of 8)."""
    I = x_tm_flat.shape[-1]
    G = layers[0][1].shape[-1]        # 4H (whh is (H, 4H))
    H = G // 4
    num_layers = len(layers)

    inputs = [x_tm_flat]
    in_specs = [pl.BlockSpec((T * Bp, I), lambda: (0, 0))]
    for wih, whh, b in layers:
        inputs += [wih, whh, b]
        in_specs += [pl.BlockSpec(wih.shape, lambda: (0, 0)),
                     pl.BlockSpec(whh.shape, lambda: (0, 0)),
                     pl.BlockSpec(b.shape, lambda: (0, 0))]
    inputs += [fc_w, fc_b]
    in_specs += [pl.BlockSpec(fc_w.shape, lambda: (0, 0)),
                 pl.BlockSpec(fc_b.shape, lambda: (0, 0))]

    scratch_shapes = [
        pltpu.VMEM((T, Bp, H), jnp.float32),   # hidden sequence (reused per layer)
        pltpu.VMEM((T, Bp, G), jnp.float32),   # hoisted fused-gate projections
    ]

    # Explicit VMEM budget: double-buffered I/O + scratch + generous margin,
    # clamped so it also fits v7x's smaller VMEM.
    io_bytes = sum(int(a.size) * a.dtype.itemsize for a in inputs) + Bp * 4
    scratch_bytes = (T * Bp * H + T * Bp * G) * 4
    vmem_limit = int(min(max(2 * io_bytes + scratch_bytes + (8 << 20), 16 << 20),
                         64 << 20))

    return pl.pallas_call(
        _make_fused_kernel(num_layers, T, Bp, H),
        out_shape=jax.ShapeDtypeStruct((Bp, 1), jnp.float32),
        in_specs=in_specs,
        out_specs=pl.BlockSpec((Bp, 1), lambda: (0, 0)),
        scratch_shapes=scratch_shapes,
        compiler_params=pltpu.CompilerParams(vmem_limit_bytes=vmem_limit),
    )(*inputs)


@jax.jit
def lstm_forward(x, params):
    """x: (B, T, input_size) float32 (batch_first, like the PyTorch module)."""
    B, T, I = x.shape
    Bp = max(8, ((B + 7) // 8) * 8)                       # pad batch to sublanes
    x_p = jnp.pad(x.astype(jnp.float32), ((0, Bp - B), (0, 0), (0, 0)))
    # One-time tiny re-layout to time-major flat rows (t*Bp + b) in XLA.
    x_tm_flat = jnp.transpose(x_p, (1, 0, 2)).reshape(T * Bp, I)
    out_p = _fused_forward(x_tm_flat, params["layers"],
                           params["fc_w"], params["fc_b"], T, Bp)
    return out_p[:B]                                      # drop pad rows -> (B, 1)


# ----------------------------------------------------------------------------
# Deterministic parameter init (same shapes/init as nn.LSTM / nn.Linear),
# preprocessed to the LANE-FUSED layout the kernel consumes.
# PyTorch gate order i, f, g, o is preserved as 4 contiguous H-lane blocks.
# ----------------------------------------------------------------------------
def init_params(key, input_size, hidden_size, num_layers):
    H = hidden_size
    bound = 1.0 / (H ** 0.5)
    layers = []
    for layer in range(num_layers):
        in_sz = input_size if layer == 0 else H
        key, k1, k2, k3, k4 = jax.random.split(key, 5)
        w_ih = jax.random.uniform(k1, (4 * H, in_sz), jnp.float32, -bound, bound)
        w_hh = jax.random.uniform(k2, (4 * H, H), jnp.float32, -bound, bound)
        b_ih = jax.random.uniform(k3, (4 * H,), jnp.float32, -bound, bound)
        b_hh = jax.random.uniform(k4, (4 * H,), jnp.float32, -bound, bound)
        # Lane-fused layout: columns blocked [i | f | g | o], each H lanes wide.
        wih_f = w_ih.T                                   # (in, 4H)
        whh_f = w_hh.T                                   # (H,  4H)
        b_f = (b_ih + b_hh).reshape(1, 4 * H)            # (1,  4H)
        layers.append((wih_f, whh_f, b_f))
    key, k5, k6 = jax.random.split(key, 3)
    fc_w = jax.random.uniform(k5, (1, H), jnp.float32, -bound, bound)
    fc_b = jax.random.uniform(k6, (1,), jnp.float32, -bound, bound)
    return {"layers": layers, "fc_w": fc_w, "fc_b": fc_b.reshape(1, 1)}


# ----------------------------------------------------------------------------
# Pure-JAX reference (same math as torch.nn.LSTM forward + Linear)
# ----------------------------------------------------------------------------
def lstm_reference(x, params):
    layers = params["layers"]
    H = layers[0][1].shape[0]                             # whh_f is (H, 4H)
    B, T, _ = x.shape
    seq = jnp.transpose(x, (1, 0, 2))                     # (T, B, in)
    for wih_f, whh_f, b_f in layers:
        h = jnp.zeros((B, H), jnp.float32)
        c = jnp.zeros((B, H), jnp.float32)
        outs = []
        for t in range(T):
            z = seq[t] @ wih_f + h @ whh_f + b_f          # (B, 4H)
            i = jax.nn.sigmoid(z[:, 0 * H:1 * H])
            f = jax.nn.sigmoid(z[:, 1 * H:2 * H])
            g = jnp.tanh(z[:, 2 * H:3 * H])
            o = jax.nn.sigmoid(z[:, 3 * H:4 * H])
            c = f * c + i * g
            h = o * jnp.tanh(c)
            outs.append(h)
        seq = jnp.stack(outs, axis=0)
    return seq[-1] @ params["fc_w"].T + params["fc_b"]


# ----------------------------------------------------------------------------
if __name__ == "__main__":
    B, T, INPUT_SIZE, HIDDEN_SIZE, NUM_LAYERS = 2, 8, 16, 32, 2

    key = jax.random.PRNGKey(0)
    key, kx = jax.random.split(key)
    x = jax.random.normal(kx, (B, T, INPUT_SIZE), jnp.float32)
    params = init_params(key, INPUT_SIZE, HIDDEN_SIZE, NUM_LAYERS)

    out = lstm_forward(x, params)
    out = jax.block_until_ready(out)
    assert out.shape == (B, 1)

    ref = lstm_reference(x, params)
    assert jnp.allclose(out, ref, atol=1e-4, rtol=1e-4), (out, ref)

    print("KERNEL_OK")
</pallas_src>

<mosaic_0001>
module attributes {stable_mosaic.version = 11 : i64} {
  func.func @kernel(%arg0: memref<64x16xf32, #tpu.memory_space<vmem>>, %arg1: memref<16x128xf32, #tpu.memory_space<vmem>>, %arg2: memref<32x128xf32, #tpu.memory_space<vmem>>, %arg3: memref<1x128xf32, #tpu.memory_space<vmem>>, %arg4: memref<32x128xf32, #tpu.memory_space<vmem>>, %arg5: memref<32x128xf32, #tpu.memory_space<vmem>>, %arg6: memref<1x128xf32, #tpu.memory_space<vmem>>, %arg7: memref<1x32xf32, #tpu.memory_space<vmem>>, %arg8: memref<1x1xf32, #tpu.memory_space<vmem>>, %arg9: memref<8x1xf32, #tpu.memory_space<vmem>>, %arg10: memref<8x8x32xf32, #tpu.memory_space<vmem>>, %arg11: memref<8x8x128xf32, #tpu.memory_space<vmem>>) attributes {dimension_semantics = [], scalar_prefetch = 0 : i64, scratch_operands = 2 : i64, tpu.core_type = #tpu.core_type<tc>} {
    %c0 = arith.constant 0 : index
    %c0_0 = arith.constant 0 : index
    %0 = vector.load %arg0[%c0, %c0_0] : memref<64x16xf32, #tpu.memory_space<vmem>>, vector<64x16xf32>
    %c0_1 = arith.constant 0 : index
    %c0_2 = arith.constant 0 : index
    %1 = vector.load %arg1[%c0_1, %c0_2] : memref<16x128xf32, #tpu.memory_space<vmem>>, vector<16x128xf32>
    %cst = arith.constant dense<0.000000e+00> : vector<64x128xf32>
    %2 = tpu.matmul %0, %1, %cst {dimension_numbers = #tpu.dot_dimension_numbers<[1], [0], [0], [1], [0, 0, 1, 1], [], []>} : vector<64x16xf32>, vector<16x128xf32>, vector<64x128xf32> -> vector<64x128xf32>
    %c0_3 = arith.constant 0 : index
    %c0_4 = arith.constant 0 : index
    %3 = vector.load %arg3[%c0_3, %c0_4] : memref<1x128xf32, #tpu.memory_space<vmem>>, vector<1x128xf32>
    %4 = vector.broadcast %3 : vector<1x128xf32> to vector<64x128xf32>
    %5 = arith.addf %2, %4 : vector<64x128xf32>
    %6 = vector.shape_cast %5 : vector<64x128xf32> to vector<8x8x128xf32>
    %c0_5 = arith.constant 0 : index
    %c0_6 = arith.constant 0 : index
    %c0_7 = arith.constant 0 : index
    %7 = vector.load %arg11[%c0_5, %c0_6, %c0_7] : memref<8x8x128xf32, #tpu.memory_space<vmem>>, vector<8x8x128xf32>
    tpu.vector_store %arg11[%c0_5, %c0_6, %c0_7], %6 {strides = array<i32>} : memref<8x8x128xf32, #tpu.memory_space<vmem>>, vector<8x8x128xf32>,
    %cst_8 = arith.constant 0.000000e+00 : f32
    %8 = vector.broadcast %cst_8 : f32 to vector<8x32xf32>
    %cst_9 = arith.constant 0.000000e+00 : f32
    %9 = vector.broadcast %cst_9 : f32 to vector<8x32xf32>
    %c0_i32 = arith.constant 0 : i32
    %10 = arith.index_cast %c0_i32 : i32 to index
    %c0_10 = arith.constant 0 : index
    %c0_11 = arith.constant 0 : index
    %11 = vector.load %arg11[%10, %c0_10, %c0_11] : memref<8x8x128xf32, #tpu.memory_space<vmem>>, vector<1x8x128xf32>
    %12 = vector.shape_cast %11 : vector<1x8x128xf32> to vector<8x128xf32>
    %c0_12 = arith.constant 0 : index
    %c0_13 = arith.constant 0 : index
    %13 = vector.load %arg2[%c0_12, %c0_13] : memref<32x128xf32, #tpu.memory_space<vmem>>, vector<32x128xf32>
    %cst_14 = arith.constant dense<0.000000e+00> : vector<8x128xf32>
    %14 = tpu.matmul %8, %13, %cst_14 {dimension_numbers = #tpu.dot_dimension_numbers<[1], [0], [0], [1], [0, 0, 1, 1], [], []>} : vector<8x32xf32>, vector<32x128xf32>, vector<8x128xf32> -> vector<8x128xf32>
    %15 = arith.addf %12, %14 : vector<8x128xf32>
    %16 = arith.negf %15 : vector<8x128xf32>
    %17 = math.exp %16 : vector<8x128xf32>
    %cst_15 = arith.constant 1.000000e+00 : f32
    %18 = vector.broadcast %cst_15 : f32 to vector<8x128xf32>
    %19 = arith.addf %18, %17 : vector<8x128xf32>
    %20 = arith.divf %18, %19 : vector<8x128xf32>
    %21 = vector.extract_strided_slice %20 {offsets = [0, 0], sizes = [8, 32], strides = [1, 1]} : vector<8x128xf32> to vector<8x32xf32>
    %22 = vector.extract_strided_slice %20 {offsets = [0, 32], sizes = [8, 32], strides = [1, 1]} : vector<8x128xf32> to vector<8x32xf32>
    %23 = vector.extract_strided_slice %20 {offsets = [0, 96], sizes = [8, 32], strides = [1, 1]} : vector<8x128xf32> to vector<8x32xf32>
    %24 = vector.extract_strided_slice %15 {offsets = [0, 64], sizes = [8, 32], strides = [1, 1]} : vector<8x128xf32> to vector<8x32xf32>
    %25 = math.tanh %24 : vector<8x32xf32>
    %26 = arith.mulf %22, %9 : vector<8x32xf32>
    %27 = arith.mulf %21, %25 : vector<8x32xf32>
    %28 = arith.addf %26, %27 : vector<8x32xf32>
    %29 = math.tanh %28 : vector<8x32xf32>
    %30 = arith.mulf %23, %29 : vector<8x32xf32>
    %31 = arith.index_cast %c0_i32 : i32 to index
    %c0_16 = arith.constant 0 : index
    %c0_17 = arith.constant 0 : index
    %32 = vector.load %arg10[%31, %c0_16, %c0_17] : memref<8x8x32xf32, #tpu.memory_space<vmem>>, vector<1x8x32xf32>
    %33 = vector.shape_cast %32 : vector<1x8x32xf32> to vector<8x32xf32>
    %34 = vector.shape_cast %30 : vector<8x32xf32> to vector<1x8x32xf32>
    tpu.vector_store %arg10[%31, %c0_16, %c0_17], %34 {strides = array<i32>} : memref<8x8x32xf32, #tpu.memory_space<vmem>>, vector<1x8x32xf32>,
    %c1_i32 = arith.constant 1 : i32
    %35 = arith.index_cast %c1_i32 : i32 to index
    %c0_18 = arith.constant 0 : index
    %c0_19 = arith.constant 0 : index
    %36 = vector.load %arg11[%35, %c0_18, %c0_19] : memref<8x8x128xf32, #tpu.memory_space<vmem>>, vector<1x8x128xf32>
    %37 = vector.shape_cast %36 : vector<1x8x128xf32> to vector<8x128xf32>
    %c0_20 = arith.constant 0 : index
    %c0_21 = arith.constant 0 : index
    %38 = vector.load %arg2[%c0_20, %c0_21] : memref<32x128xf32, #tpu.memory_space<vmem>>, vector<32x128xf32>
    %cst_22 = arith.constant dense<0.000000e+00> : vector<8x128xf32>
    %39 = tpu.matmul %30, %38, %cst_22 {dimension_numbers = #tpu.dot_dimension_numbers<[1], [0], [0], [1], [0, 0, 1, 1], [], []>} : vector<8x32xf32>, vector<32x128xf32>, vector<8x128xf32> -> vector<8x128xf32>
    %40 = arith.addf %37, %39 : vector<8x128xf32>
    %41 = arith.negf %40 : vector<8x128xf32>
    %42 = math.exp %41 : vector<8x128xf32>
    %cst_23 = arith.constant 1.000000e+00 : f32
    %43 = vector.broadcast %cst_23 : f32 to vector<8x128xf32>
    %44 = arith.addf %43, %42 : vector<8x128xf32>
    %45 = arith.divf %43, %44 : vector<8x128xf32>
    %46 = vector.extract_strided_slice %45 {offsets = [0, 0], sizes = [8, 32], strides = [1, 1]} : vector<8x128xf32> to vector<8x32xf32>
    %47 = vector.extract_strided_slice %45 {offsets = [0, 32], sizes = [8, 32], strides = [1, 1]} : vector<8x128xf32> to vector<8x32xf32>
    %48 = vector.extract_strided_slice %45 {offsets = [0, 96], sizes = [8, 32], strides = [1, 1]} : vector<8x128xf32> to vector<8x32xf32>
    %49 = vector.extract_strided_slice %40 {offsets = [0, 64], sizes = [8, 32], strides = [1, 1]} : vector<8x128xf32> to vector<8x32xf32>
    %50 = math.tanh %49 : vector<8x32xf32>
    %51 = arith.mulf %47, %28 : vector<8x32xf32>
    %52 = arith.mulf %46, %50 : vector<8x32xf32>
    %53 = arith.addf %51, %52 : vector<8x32xf32>
    %54 = math.tanh %53 : vector<8x32xf32>
    %55 = arith.mulf %48, %54 : vector<8x32xf32>
    %56 = arith.index_cast %c1_i32 : i32 to index
    %c0_24 = arith.constant 0 : index
    %c0_25 = arith.constant 0 : index
    %57 = vector.load %arg10[%56, %c0_24, %c0_25] : memref<8x8x32xf32, #tpu.memory_space<vmem>>, vector<1x8x32xf32>
    %58 = vector.shape_cast %57 : vector<1x8x32xf32> to vector<8x32xf32>
    %59 = vector.shape_cast %55 : vector<8x32xf32> to vector<1x8x32xf32>
    tpu.vector_store %arg10[%56, %c0_24, %c0_25], %59 {strides = array<i32>} : memref<8x8x32xf32, #tpu.memory_space<vmem>>, vector<1x8x32xf32>,
    %c2_i32 = arith.constant 2 : i32
    %60 = arith.index_cast %c2_i32 : i32 to index
    %c0_26 = arith.constant 0 : index
    %c0_27 = arith.constant 0 : index
    %61 = vector.load %arg11[%60, %c0_26, %c0_27] : memref<8x8x128xf32, #tpu.memory_space<vmem>>, vector<1x8x128xf32>
    %62 = vector.shape_cast %61 : vector<1x8x128xf32> to vector<8x128xf32>
    %c0_28 = arith.constant 0 : index
    %c0_29 = arith.constant 0 : index
    %63 = vector.load %arg2[%c0_28, %c0_29] : memref<32x128xf32, #tpu.memory_space<vmem>>, vector<32x128xf32>
    %cst_30 = arith.constant dense<0.000000e+00> : vector<8x128xf32>
    %64 = tpu.matmul %55, %63, %cst_30 {dimension_numbers = #tpu.dot_dimension_numbers<[1], [0], [0], [1], [0, 0, 1, 1], [], []>} : vector<8x32xf32>, vector<32x128xf32>, vector<8x128xf32> -> vector<8x128xf32>
    %65 = arith.addf %62, %64 : vector<8x128xf32>
    %66 = arith.negf %65 : vector<8x128xf32>
    %67 = math.exp %66 : vector<8x128xf32>
    %cst_31 = arith.constant 1.000000e+00 : f32
    %68 = vector.broadcast %cst_31 : f32 to vector<8x128xf32>
    %69 = arith.addf %68, %67 : vector<8x128xf32>
    %70 = arith.divf %68, %69 : vector<8x128xf32>
    %71 = vector.extract_strided_slice %70 {offsets = [0, 0], sizes = [8, 32], strides = [1, 1]} : vector<8x128xf32> to vector<8x32xf32>
    %72 = vector.extract_strided_slice %70 {offsets = [0, 32], sizes = [8, 32], strides = [1, 1]} : vector<8x128xf32> to vector<8x32xf32>
    %73 = vector.extract_strided_slice %70 {offsets = [0, 96], sizes = [8, 32], strides = [1, 1]} : vector<8x128xf32> to vector<8x32xf32>
    %74 = vector.extract_strided_slice %65 {offsets = [0, 64], sizes = [8, 32], strides = [1, 1]} : vector<8x128xf32> to vector<8x32xf32>
    %75 = math.tanh %74 : vector<8x32xf32>
    %76 = arith.mulf %72, %53 : vector<8x32xf32>
    %77 = arith.mulf %71, %75 : vector<8x32xf32>
    %78 = arith.addf %76, %77 : vector<8x32xf32>
    %79 = math.tanh %78 : vector<8x32xf32>
    %80 = arith.mulf %73, %79 : vector<8x32xf32>
    %81 = arith.index_cast %c2_i32 : i32 to index
    %c0_32 = arith.constant 0 : index
    %c0_33 = arith.constant 0 : index
    %82 = vector.load %arg10[%81, %c0_32, %c0_33] : memref<8x8x32xf32, #tpu.memory_space<vmem>>, vector<1x8x32xf32>
    %83 = vector.shape_cast %82 : vector<1x8x32xf32> to vector<8x32xf32>
    %84 = vector.shape_cast %80 : vector<8x32xf32> to vector<1x8x32xf32>
    tpu.vector_store %arg10[%81, %c0_32, %c0_33], %84 {strides = array<i32>} : memref<8x8x32xf32, #tpu.memory_space<vmem>>, vector<1x8x32xf32>,
    %c3_i32 = arith.constant 3 : i32
    %85 = arith.index_cast %c3_i32 : i32 to index
    %c0_34 = arith.constant 0 : index
    %c0_35 = arith.constant 0 : index
    %86 = vector.load %arg11[%85, %c0_34, %c0_35] : memref<8x8x128xf32, #tpu.memory_space<vmem>>, vector<1x8x128xf32>
    %87 = vector.shape_cast %86 : vector<1x8x128xf32> to vector<8x128xf32>
    %c0_36 = arith.constant 0 : index
    %c0_37 = arith.constant 0 : index
    %88 = vector.load %arg2[%c0_36, %c0_37] : memref<32x128xf32, #tpu.memory_space<vmem>>, vector<32x128xf32>
    %cst_38 = arith.constant dense<0.000000e+00> : vector<8x128xf32>
    %89 = tpu.matmul %80, %88, %cst_38 {dimension_numbers = #tpu.dot_dimension_numbers<[1], [0], [0], [1], [0, 0, 1, 1], [], []>} : vector<8x32xf32>, vector<32x128xf32>, vector<8x128xf32> -> vector<8x128xf32>
    %90 = arith.addf %87, %89 : vector<8x128xf32>
    %91 = arith.negf %90 : vector<8x128xf32>
    %92 = math.exp %91 : vector<8x128xf32>
    %cst_39 = arith.constant 1.000000e+00 : f32
    %93 = vector.broadcast %cst_39 : f32 to vector<8x128xf32>
    %94 = arith.addf %93, %92 : vector<8x128xf32>
    %95 = arith.divf %93, %94 : vector<8x128xf32>
    %96 = vector.extract_strided_slice %95 {offsets = [0, 0], sizes = [8, 32], strides = [1, 1]} : vector<8x128xf32> to vector<8x32xf32>
    %97 = vector.extract_strided_slice %95 {offsets = [0, 32], sizes = [8, 32], strides = [1, 1]} : vector<8x128xf32> to vector<8x32xf32>
    %98 = vector.extract_strided_slice %95 {offsets = [0, 96], sizes = [8, 32], strides = [1, 1]} : vector<8x128xf32> to vector<8x32xf32>
    %99 = vector.extract_strided_slice %90 {offsets = [0, 64], sizes = [8, 32], strides = [1, 1]} : vector<8x128xf32> to vector<8x32xf32>
    %100 = math.tanh %99 : vector<8x32xf32>
    %101 = arith.mulf %97, %78 : vector<8x32xf32>
    %102 = arith.mulf %96, %100 : vector<8x32xf32>
    %103 = arith.addf %101, %102 : vector<8x32xf32>
    %104 = math.tanh %103 : vector<8x32xf32>
    %105 = arith.mulf %98, %104 : vector<8x32xf32>
    %106 = arith.index_cast %c3_i32 : i32 to index
    %c0_40 = arith.constant 0 : index
    %c0_41 = arith.constant 0 : index
    %107 = vector.load %arg10[%106, %c0_40, %c0_41] : memref<8x8x32xf32, #tpu.memory_space<vmem>>, vector<1x8x32xf32>
    %108 = vector.shape_cast %107 : vector<1x8x32xf32> to vector<8x32xf32>
    %109 = vector.shape_cast %105 : vector<8x32xf32> to vector<1x8x32xf32>
    tpu.vector_store %arg10[%106, %c0_40, %c0_41], %109 {strides = array<i32>} : memref<8x8x32xf32, #tpu.memory_space<vmem>>, vector<1x8x32xf32>,
    %c4_i32 = arith.constant 4 : i32
    %110 = arith.index_cast %c4_i32 : i32 to index
    %c0_42 = arith.constant 0 : index
    %c0_43 = arith.constant 0 : index
    %111 = vector.load %arg11[%110, %c0_42, %c0_43] : memref<8x8x128xf32, #tpu.memory_space<vmem>>, vector<1x8x128xf32>
    %112 = vector.shape_cast %111 : vector<1x8x128xf32> to vector<8x128xf32>
    %c0_44 = arith.constant 0 : index
    %c0_45 = arith.constant 0 : index
    %113 = vector.load %arg2[%c0_44, %c0_45] : memref<32x128xf32, #tpu.memory_space<vmem>>, vector<32x128xf32>
    %cst_46 = arith.constant dense<0.000000e+00> : vector<8x128xf32>
    %114 = tpu.matmul %105, %113, %cst_46 {dimension_numbers = #tpu.dot_dimension_numbers<[1], [0], [0], [1], [0, 0, 1, 1], [], []>} : vector<8x32xf32>, vector<32x128xf32>, vector<8x128xf32> -> vector<8x128xf32>
    %115 = arith.addf %112, %114 : vector<8x128xf32>
    %116 = arith.negf %115 : vector<8x128xf32>
    %117 = math.exp %116 : vector<8x128xf32>
    %cst_47 = arith.constant 1.000000e+00 : f32
    %118 = vector.broadcast %cst_47 : f32 to vector<8x128xf32>
    %119 = arith.addf %118, %117 : vector<8x128xf32>
    %120 = arith.divf %118, %119 : vector<8x128xf32>
    %121 = vector.extract_strided_slice %120 {offsets = [0, 0], sizes = [8, 32], strides = [1, 1]} : vector<8x128xf32> to vector<8x32xf32>
    %122 = vector.extract_strided_slice %120 {offsets = [0, 32], sizes = [8, 32], strides = [1, 1]} : vector<8x128xf32> to vector<8x32xf32>
    %123 = vector.extract_strided_slice %120 {offsets = [0, 96], sizes = [8, 32], strides = [1, 1]} : vector<8x128xf32> to vector<8x32xf32>
    %124 = vector.extract_strided_slice %115 {offsets = [0, 64], sizes = [8, 32], strides = [1, 1]} : vector<8x128xf32> to vector<8x32xf32>
    %125 = math.tanh %124 : vector<8x32xf32>
    %126 = arith.mulf %122, %103 : vector<8x32xf32>
    %127 = arith.mulf %121, %125 : vector<8x32xf32>
    %128 = arith.addf %126, %127 : vector<8x32xf32>
    %129 = math.tanh %128 : vector<8x32xf32>
    %130 = arith.mulf %123, %129 : vector<8x32xf32>
    %131 = arith.index_cast %c4_i32 : i32 to index
    %c0_48 = arith.constant 0 : index
    %c0_49 = arith.constant 0 : index
    %132 = vector.load %arg10[%131, %c0_48, %c0_49] : memref<8x8x32xf32, #tpu.memory_space<vmem>>, vector<1x8x32xf32>
    %133 = vector.shape_cast %132 : vector<1x8x32xf32> to vector<8x32xf32>
    %134 = vector.shape_cast %130 : vector<8x32xf32> to vector<1x8x32xf32>
    tpu.vector_store %arg10[%131, %c0_48, %c0_49], %134 {strides = array<i32>} : memref<8x8x32xf32, #tpu.memory_space<vmem>>, vector<1x8x32xf32>,
    %c5_i32 = arith.constant 5 : i32
    %135 = arith.index_cast %c5_i32 : i32 to index
    %c0_50 = arith.constant 0 : index
    %c0_51 = arith.constant 0 : index
    %136 = vector.load %arg11[%135, %c0_50, %c0_51] : memref<8x8x128xf32, #tpu.memory_space<vmem>>, vector<1x8x128xf32>
    %137 = vector.shape_cast %136 : vector<1x8x128xf32> to vector<8x128xf32>
    %c0_52 = arith.constant 0 : index
    %c0_53 = arith.constant 0 : index
    %138 = vector.load %arg2[%c0_52, %c0_53] : memref<32x128xf32, #tpu.memory_space<vmem>>, vector<32x128xf32>
    %cst_54 = arith.constant dense<0.000000e+00> : vector<8x128xf32>
    %139 = tpu.matmul %130, %138, %cst_54 {dimension_numbers = #tpu.dot_dimension_numbers<[1], [0], [0], [1], [0, 0, 1, 1], [], []>} : vector<8x32xf32>, vector<32x128xf32>, vector<8x128xf32> -> vector<8x128xf32>
    %140 = arith.addf %137, %139 : vector<8x128xf32>
    %141 = arith.negf %140 : vector<8x128xf32>
    %142 = math.exp %141 : vector<8x128xf32>
    %cst_55 = arith.constant 1.000000e+00 : f32
    %143 = vector.broadcast %cst_55 : f32 to vector<8x128xf32>
    %144 = arith.addf %143, %142 : vector<8x128xf32>
    %145 = arith.divf %143, %144 : vector<8x128xf32>
    %146 = vector.extract_strided_slice %145 {offsets = [0, 0], sizes = [8, 32], strides = [1, 1]} : vector<8x128xf32> to vector<8x32xf32>
    %147 = vector.extract_strided_slice %145 {offsets = [0, 32], sizes = [8, 32], strides = [1, 1]} : vector<8x128xf32> to vector<8x32xf32>
    %148 = vector.extract_strided_slice %145 {offsets = [0, 96], sizes = [8, 32], strides = [1, 1]} : vector<8x128xf32> to vector<8x32xf32>
    %149 = vector.extract_strided_slice %140 {offsets = [0, 64], sizes = [8, 32], strides = [1, 1]} : vector<8x128xf32> to vector<8x32xf32>
    %150 = math.tanh %149 : vector<8x32xf32>
    %151 = arith.mulf %147, %128 : vector<8x32xf32>
    %152 = arith.mulf %146, %150 : vector<8x32xf32>
    %153 = arith.addf %151, %152 : vector<8x32xf32>
    %154 = math.tanh %153 : vector<8x32xf32>
    %155 = arith.mulf %148, %154 : vector<8x32xf32>
    %156 = arith.index_cast %c5_i32 : i32 to index
    %c0_56 = arith.constant 0 : index
    %c0_57 = arith.constant 0 : index
    %157 = vector.load %arg10[%156, %c0_56, %c0_57] : memref<8x8x32xf32, #tpu.memory_space<vmem>>, vector<1x8x32xf32>
    %158 = vector.shape_cast %157 : vector<1x8x32xf32> to vector<8x32xf32>
    %159 = vector.shape_cast %155 : vector<8x32xf32> to vector<1x8x32xf32>
    tpu.vector_store %arg10[%156, %c0_56, %c0_57], %159 {strides = array<i32>} : memref<8x8x32xf32, #tpu.memory_space<vmem>>, vector<1x8x32xf32>,
    %c6_i32 = arith.constant 6 : i32
    %160 = arith.index_cast %c6_i32 : i32 to index
    %c0_58 = arith.constant 0 : index
    %c0_59 = arith.constant 0 : index
    %161 = vector.load %arg11[%160, %c0_58, %c0_59] : memref<8x8x128xf32, #tpu.memory_space<vmem>>, vector<1x8x128xf32>
    %162 = vector.shape_cast %161 : vector<1x8x128xf32> to vector<8x128xf32>
    %c0_60 = arith.constant 0 : index
    %c0_61 = arith.constant 0 : index
    %163 = vector.load %arg2[%c0_60, %c0_61] : memref<32x128xf32, #tpu.memory_space<vmem>>, vector<32x128xf32>
    %cst_62 = arith.constant dense<0.000000e+00> : vector<8x128xf32>
    %164 = tpu.matmul %155, %163, %cst_62 {dimension_numbers = #tpu.dot_dimension_numbers<[1], [0], [0], [1], [0, 0, 1, 1], [], []>} : vector<8x32xf32>, vector<32x128xf32>, vector<8x128xf32> -> vector<8x128xf32>
    %165 = arith.addf %162, %164 : vector<8x128xf32>
    %166 = arith.negf %165 : vector<8x128xf32>
    %167 = math.exp %166 : vector<8x128xf32>
    %cst_63 = arith.constant 1.000000e+00 : f32
    %168 = vector.broadcast %cst_63 : f32 to vector<8x128xf32>
    %169 = arith.addf %168, %167 : vector<8x128xf32>
    %170 = arith.divf %168, %169 : vector<8x128xf32>
    %171 = vector.extract_strided_slice %170 {offsets = [0, 0], sizes = [8, 32], strides = [1, 1]} : vector<8x128xf32> to vector<8x32xf32>
    %172 = vector.extract_strided_slice %170 {offsets = [0, 32], sizes = [8, 32], strides = [1, 1]} : vector<8x128xf32> to vector<8x32xf32>
    %173 = vector.extract_strided_slice %170 {offsets = [0, 96], sizes = [8, 32], strides = [1, 1]} : vector<8x128xf32> to vector<8x32xf32>
    %174 = vector.extract_strided_slice %165 {offsets = [0, 64], sizes = [8, 32], strides = [1, 1]} : vector<8x128xf32> to vector<8x32xf32>
    %175 = math.tanh %174 : vector<8x32xf32>
    %176 = arith.mulf %172, %153 : vector<8x32xf32>
    %177 = arith.mulf %171, %175 : vector<8x32xf32>
    %178 = arith.addf %176, %177 : vector<8x32xf32>
    %179 = math.tanh %178 : vector<8x32xf32>
    %180 = arith.mulf %173, %179 : vector<8x32xf32>
    %181 = arith.index_cast %c6_i32 : i32 to index
    %c0_64 = arith.constant 0 : index
    %c0_65 = arith.constant 0 : index
    %182 = vector.load %arg10[%181, %c0_64, %c0_65] : memref<8x8x32xf32, #tpu.memory_space<vmem>>, vector<1x8x32xf32>
    %183 = vector.shape_cast %182 : vector<1x8x32xf32> to vector<8x32xf32>
    %184 = vector.shape_cast %180 : vector<8x32xf32> to vector<1x8x32xf32>
    tpu.vector_store %arg10[%181, %c0_64, %c0_65], %184 {strides = array<i32>} : memref<8x8x32xf32, #tpu.memory_space<vmem>>, vector<1x8x32xf32>,
    %c7_i32 = arith.constant 7 : i32
    %185 = arith.index_cast %c7_i32 : i32 to index
    %c0_66 = arith.constant 0 : index
    %c0_67 = arith.constant 0 : index
    %186 = vector.load %arg11[%185, %c0_66, %c0_67] : memref<8x8x128xf32, #tpu.memory_space<vmem>>, vector<1x8x128xf32>
    %187 = vector.shape_cast %186 : vector<1x8x128xf32> to vector<8x128xf32>
    %c0_68 = arith.constant 0 : index
    %c0_69 = arith.constant 0 : index
    %188 = vector.load %arg2[%c0_68, %c0_69] : memref<32x128xf32, #tpu.memory_space<vmem>>, vector<32x128xf32>
    %cst_70 = arith.constant dense<0.000000e+00> : vector<8x128xf32>
    %189 = tpu.matmul %180, %188, %cst_70 {dimension_numbers = #tpu.dot_dimension_numbers<[1], [0], [0], [1], [0, 0, 1, 1], [], []>} : vector<8x32xf32>, vector<32x128xf32>, vector<8x128xf32> -> vector<8x128xf32>
    %190 = arith.addf %187, %189 : vector<8x128xf32>
    %191 = arith.negf %190 : vector<8x128xf32>
    %192 = math.exp %191 : vector<8x128xf32>
    %cst_71 = arith.constant 1.000000e+00 : f32
    %193 = vector.broadcast %cst_71 : f32 to vector<8x128xf32>
    %194 = arith.addf %193, %192 : vector<8x128xf32>
    %195 = arith.divf %193, %194 : vector<8x128xf32>
    %196 = vector.extract_strided_slice %195 {offsets = [0, 0], sizes = [8, 32], strides = [1, 1]} : vector<8x128xf32> to vector<8x32xf32>
    %197 = vector.extract_strided_slice %195 {offsets = [0, 32], sizes = [8, 32], strides = [1, 1]} : vector<8x128xf32> to vector<8x32xf32>
    %198 = vector.extract_strided_slice %195 {offsets = [0, 96], sizes = [8, 32], strides = [1, 1]} : vector<8x128xf32> to vector<8x32xf32>
    %199 = vector.extract_strided_slice %190 {offsets = [0, 64], sizes = [8, 32], strides = [1, 1]} : vector<8x128xf32> to vector<8x32xf32>
    %200 = math.tanh %199 : vector<8x32xf32>
    %201 = arith.mulf %197, %178 : vector<8x32xf32>
    %202 = arith.mulf %196, %200 : vector<8x32xf32>
    %203 = arith.addf %201, %202 : vector<8x32xf32>
    %204 = math.tanh %203 : vector<8x32xf32>
    %205 = arith.mulf %198, %204 : vector<8x32xf32>
    %206 = arith.index_cast %c7_i32 : i32 to index
    %c0_72 = arith.constant 0 : index
    %c0_73 = arith.constant 0 : index
    %207 = vector.load %arg10[%206, %c0_72, %c0_73] : memref<8x8x32xf32, #tpu.memory_space<vmem>>, vector<1x8x32xf32>
    %208 = vector.shape_cast %207 : vector<1x8x32xf32> to vector<8x32xf32>
    %209 = vector.shape_cast %205 : vector<8x32xf32> to vector<1x8x32xf32>
    tpu.vector_store %arg10[%206, %c0_72, %c0_73], %209 {strides = array<i32>} : memref<8x8x32xf32, #tpu.memory_space<vmem>>, vector<1x8x32xf32>,
    %c8_i32 = arith.constant 8 : i32
    %c0_74 = arith.constant 0 : index
    %c0_75 = arith.constant 0 : index
    %c0_76 = arith.constant 0 : index
    %210 = vector.load %arg10[%c0_74, %c0_75, %c0_76] : memref<8x8x32xf32, #tpu.memory_space<vmem>>, vector<8x8x32xf32>
    %211 = vector.shape_cast %210 : vector<8x8x32xf32> to vector<64x32xf32>
    %c0_77 = arith.constant 0 : index
    %c0_78 = arith.constant 0 : index
    %212 = vector.load %arg4[%c0_77, %c0_78] : memref<32x128xf32, #tpu.memory_space<vmem>>, vector<32x128xf32>
    %cst_79 = arith.constant dense<0.000000e+00> : vector<64x128xf32>
    %213 = tpu.matmul %211, %212, %cst_79 {dimension_numbers = #tpu.dot_dimension_numbers<[1], [0], [0], [1], [0, 0, 1, 1], [], []>} : vector<64x32xf32>, vector<32x128xf32>, vector<64x128xf32> -> vector<64x128xf32>
    %c0_80 = arith.constant 0 : index
    %c0_81 = arith.constant 0 : index
    %214 = vector.load %arg6[%c0_80, %c0_81] : memref<1x128xf32, #tpu.memory_space<vmem>>, vector<1x128xf32>
    %215 = vector.broadcast %214 : vector<1x128xf32> to vector<64x128xf32>
    %216 = arith.addf %213, %215 : vector<64x128xf32>
    %217 = vector.shape_cast %216 : vector<64x128xf32> to vector<8x8x128xf32>
    %c0_82 = arith.constant 0 : index
    %c0_83 = arith.constant 0 : index
    %c0_84 = arith.constant 0 : index
    %218 = vector.load %arg11[%c0_82, %c0_83, %c0_84] : memref<8x8x128xf32, #tpu.memory_space<vmem>>, vector<8x8x128xf32>
    tpu.vector_store %arg11[%c0_82, %c0_83, %c0_84], %217 {strides = array<i32>} : memref<8x8x128xf32, #tpu.memory_space<vmem>>, vector<8x8x128xf32>,
    %cst_85 = arith.constant 0.000000e+00 : f32
    %219 = vector.broadcast %cst_85 : f32 to vector<8x32xf32>
    %cst_86 = arith.constant 0.000000e+00 : f32
    %220 = vector.broadcast %cst_86 : f32 to vector<8x32xf32>
    %c0_i32_87 = arith.constant 0 : i32
    %221 = arith.index_cast %c0_i32_87 : i32 to index
    %c0_88 = arith.constant 0 : index
    %c0_89 = arith.constant 0 : index
    %222 = vector.load %arg11[%221, %c0_88, %c0_89] : memref<8x8x128xf32, #tpu.memory_space<vmem>>, vector<1x8x128xf32>
    %223 = vector.shape_cast %222 : vector<1x8x128xf32> to vector<8x128xf32>
    %c0_90 = arith.constant 0 : index
    %c0_91 = arith.constant 0 : index
    %224 = vector.load %arg5[%c0_90, %c0_91] : memref<32x128xf32, #tpu.memory_space<vmem>>, vector<32x128xf32>
    %cst_92 = arith.constant dense<0.000000e+00> : vector<8x128xf32>
    %225 = tpu.matmul %219, %224, %cst_92 {dimension_numbers = #tpu.dot_dimension_numbers<[1], [0], [0], [1], [0, 0, 1, 1], [], []>} : vector<8x32xf32>, vector<32x128xf32>, vector<8x128xf32> -> vector<8x128xf32>
    %226 = arith.addf %223, %225 : vector<8x128xf32>
    %227 = arith.negf %226 : vector<8x128xf32>
    %228 = math.exp %227 : vector<8x128xf32>
    %cst_93 = arith.constant 1.000000e+00 : f32
    %229 = vector.broadcast %cst_93 : f32 to vector<8x128xf32>
    %230 = arith.addf %229, %228 : vector<8x128xf32>
    %231 = arith.divf %229, %230 : vector<8x128xf32>
    %232 = vector.extract_strided_slice %231 {offsets = [0, 0], sizes = [8, 32], strides = [1, 1]} : vector<8x128xf32> to vector<8x32xf32>
    %233 = vector.extract_strided_slice %231 {offsets = [0, 32], sizes = [8, 32], strides = [1, 1]} : vector<8x128xf32> to vector<8x32xf32>
    %234 = vector.extract_strided_slice %231 {offsets = [0, 96], sizes = [8, 32], strides = [1, 1]} : vector<8x128xf32> to vector<8x32xf32>
    %235 = vector.extract_strided_slice %226 {offsets = [0, 64], sizes = [8, 32], strides = [1, 1]} : vector<8x128xf32> to vector<8x32xf32>
    %236 = math.tanh %235 : vector<8x32xf32>
    %237 = arith.mulf %233, %220 : vector<8x32xf32>
    %238 = arith.mulf %232, %236 : vector<8x32xf32>
    %239 = arith.addf %237, %238 : vector<8x32xf32>
    %240 = math.tanh %239 : vector<8x32xf32>
    %241 = arith.mulf %234, %240 : vector<8x32xf32>
    %c1_i32_94 = arith.constant 1 : i32
    %242 = arith.index_cast %c1_i32_94 : i32 to index
    %c0_95 = arith.constant 0 : index
    %c0_96 = arith.constant 0 : index
    %243 = vector.load %arg11[%242, %c0_95, %c0_96] : memref<8x8x128xf32, #tpu.memory_space<vmem>>, vector<1x8x128xf32>
    %244 = vector.shape_cast %243 : vector<1x8x128xf32> to vector<8x128xf32>
    %c0_97 = arith.constant 0 : index
    %c0_98 = arith.constant 0 : index
    %245 = vector.load %arg5[%c0_97, %c0_98] : memref<32x128xf32, #tpu.memory_space<vmem>>, vector<32x128xf32>
    %cst_99 = arith.constant dense<0.000000e+00> : vector<8x128xf32>
    %246 = tpu.matmul %241, %245, %cst_99 {dimension_numbers = #tpu.dot_dimension_numbers<[1], [0], [0], [1], [0, 0, 1, 1], [], []>} : vector<8x32xf32>, vector<32x128xf32>, vector<8x128xf32> -> vector<8x128xf32>
    %247 = arith.addf %244, %246 : vector<8x128xf32>
    %248 = arith.negf %247 : vector<8x128xf32>
    %249 = math.exp %248 : vector<8x128xf32>
    %cst_100 = arith.constant 1.000000e+00 : f32
    %250 = vector.broadcast %cst_100 : f32 to vector<8x128xf32>
    %251 = arith.addf %250, %249 : vector<8x128xf32>
    %252 = arith.divf %250, %251 : vector<8x128xf32>
    %253 = vector.extract_strided_slice %252 {offsets = [0, 0], sizes = [8, 32], strides = [1, 1]} : vector<8x128xf32> to vector<8x32xf32>
    %254 = vector.extract_strided_slice %252 {offsets = [0, 32], sizes = [8, 32], strides = [1, 1]} : vector<8x128xf32> to vector<8x32xf32>
    %255 = vector.extract_strided_slice %252 {offsets = [0, 96], sizes = [8, 32], strides = [1, 1]} : vector<8x128xf32> to vector<8x32xf32>
    %256 = vector.extract_strided_slice %247 {offsets = [0, 64], sizes = [8, 32], strides = [1, 1]} : vector<8x128xf32> to vector<8x32xf32>
    %257 = math.tanh %256 : vector<8x32xf32>
    %258 = arith.mulf %254, %239 : vector<8x32xf32>
    %259 = arith.mulf %253, %257 : vector<8x32xf32>
    %260 = arith.addf %258, %259 : vector<8x32xf32>
    %261 = math.tanh %260 : vector<8x32xf32>
    %262 = arith.mulf %255, %261 : vector<8x32xf32>
    %c2_i32_101 = arith.constant 2 : i32
    %263 = arith.index_cast %c2_i32_101 : i32 to index
    %c0_102 = arith.constant 0 : index
    %c0_103 = arith.constant 0 : index
    %264 = vector.load %arg11[%263, %c0_102, %c0_103] : memref<8x8x128xf32, #tpu.memory_space<vmem>>, vector<1x8x128xf32>
    %265 = vector.shape_cast %264 : vector<1x8x128xf32> to vector<8x128xf32>
    %c0_104 = arith.constant 0 : index
    %c0_105 = arith.constant 0 : index
    %266 = vector.load %arg5[%c0_104, %c0_105] : memref<32x128xf32, #tpu.memory_space<vmem>>, vector<32x128xf32>
    %cst_106 = arith.constant dense<0.000000e+00> : vector<8x128xf32>
    %267 = tpu.matmul %262, %266, %cst_106 {dimension_numbers = #tpu.dot_dimension_numbers<[1], [0], [0], [1], [0, 0, 1, 1], [], []>} : vector<8x32xf32>, vector<32x128xf32>, vector<8x128xf32> -> vector<8x128xf32>
    %268 = arith.addf %265, %267 : vector<8x128xf32>
    %269 = arith.negf %268 : vector<8x128xf32>
    %270 = math.exp %269 : vector<8x128xf32>
    %cst_107 = arith.constant 1.000000e+00 : f32
    %271 = vector.broadcast %cst_107 : f32 to vector<8x128xf32>
    %272 = arith.addf %271, %270 : vector<8x128xf32>
    %273 = arith.divf %271, %272 : vector<8x128xf32>
    %274 = vector.extract_strided_slice %273 {offsets = [0, 0], sizes = [8, 32], strides = [1, 1]} : vector<8x128xf32> to vector<8x32xf32>
    %275 = vector.extract_strided_slice %273 {offsets = [0, 32], sizes = [8, 32], strides = [1, 1]} : vector<8x128xf32> to vector<8x32xf32>
    %276 = vector.extract_strided_slice %273 {offsets = [0, 96], sizes = [8, 32], strides = [1, 1]} : vector<8x128xf32> to vector<8x32xf32>
    %277 = vector.extract_strided_slice %268 {offsets = [0, 64], sizes = [8, 32], strides = [1, 1]} : vector<8x128xf32> to vector<8x32xf32>
    %278 = math.tanh %277 : vector<8x32xf32>
    %279 = arith.mulf %275, %260 : vector<8x32xf32>
    %280 = arith.mulf %274, %278 : vector<8x32xf32>
    %281 = arith.addf %279, %280 : vector<8x32xf32>
    %282 = math.tanh %281 : vector<8x32xf32>
    %283 = arith.mulf %276, %282 : vector<8x32xf32>
    %c3_i32_108 = arith.constant 3 : i32
    %284 = arith.index_cast %c3_i32_108 : i32 to index
    %c0_109 = arith.constant 0 : index
    %c0_110 = arith.constant 0 : index
    %285 = vector.load %arg11[%284, %c0_109, %c0_110] : memref<8x8x128xf32, #tpu.memory_space<vmem>>, vector<1x8x128xf32>
    %286 = vector.shape_cast %285 : vector<1x8x128xf32> to vector<8x128xf32>
    %c0_111 = arith.constant 0 : index
    %c0_112 = arith.constant 0 : index
    %287 = vector.load %arg5[%c0_111, %c0_112] : memref<32x128xf32, #tpu.memory_space<vmem>>, vector<32x128xf32>
    %cst_113 = arith.constant dense<0.000000e+00> : vector<8x128xf32>
    %288 = tpu.matmul %283, %287, %cst_113 {dimension_numbers = #tpu.dot_dimension_numbers<[1], [0], [0], [1], [0, 0, 1, 1], [], []>} : vector<8x32xf32>, vector<32x128xf32>, vector<8x128xf32> -> vector<8x128xf32>
    %289 = arith.addf %286, %288 : vector<8x128xf32>
    %290 = arith.negf %289 : vector<8x128xf32>
    %291 = math.exp %290 : vector<8x128xf32>
    %cst_114 = arith.constant 1.000000e+00 : f32
    %292 = vector.broadcast %cst_114 : f32 to vector<8x128xf32>
    %293 = arith.addf %292, %291 : vector<8x128xf32>
    %294 = arith.divf %292, %293 : vector<8x128xf32>
    %295 = vector.extract_strided_slice %294 {offsets = [0, 0], sizes = [8, 32], strides = [1, 1]} : vector<8x128xf32> to vector<8x32xf32>
    %296 = vector.extract_strided_slice %294 {offsets = [0, 32], sizes = [8, 32], strides = [1, 1]} : vector<8x128xf32> to vector<8x32xf32>
    %297 = vector.extract_strided_slice %294 {offsets = [0, 96], sizes = [8, 32], strides = [1, 1]} : vector<8x128xf32> to vector<8x32xf32>
    %298 = vector.extract_strided_slice %289 {offsets = [0, 64], sizes = [8, 32], strides = [1, 1]} : vector<8x128xf32> to vector<8x32xf32>
    %299 = math.tanh %298 : vector<8x32xf32>
    %300 = arith.mulf %296, %281 : vector<8x32xf32>
    %301 = arith.mulf %295, %299 : vector<8x32xf32>
    %302 = arith.addf %300, %301 : vector<8x32xf32>
    %303 = math.tanh %302 : vector<8x32xf32>
    %304 = arith.mulf %297, %303 : vector<8x32xf32>
    %c4_i32_115 = arith.constant 4 : i32
    %305 = arith.index_cast %c4_i32_115 : i32 to index
    %c0_116 = arith.constant 0 : index
    %c0_117 = arith.constant 0 : index
    %306 = vector.load %arg11[%305, %c0_116, %c0_117] : memref<8x8x128xf32, #tpu.memory_space<vmem>>, vector<1x8x128xf32>
    %307 = vector.shape_cast %306 : vector<1x8x128xf32> to vector<8x128xf32>
    %c0_118 = arith.constant 0 : index
    %c0_119 = arith.constant 0 : index
    %308 = vector.load %arg5[%c0_118, %c0_119] : memref<32x128xf32, #tpu.memory_space<vmem>>, vector<32x128xf32>
    %cst_120 = arith.constant dense<0.000000e+00> : vector<8x128xf32>
    %309 = tpu.matmul %304, %308, %cst_120 {dimension_numbers = #tpu.dot_dimension_numbers<[1], [0], [0], [1], [0, 0, 1, 1], [], []>} : vector<8x32xf32>, vector<32x128xf32>, vector<8x128xf32> -> vector<8x128xf32>
    %310 = arith.addf %307, %309 : vector<8x128xf32>
    %311 = arith.negf %310 : vector<8x128xf32>
    %312 = math.exp %311 : vector<8x128xf32>
    %cst_121 = arith.constant 1.000000e+00 : f32
    %313 = vector.broadcast %cst_121 : f32 to vector<8x128xf32>
    %314 = arith.addf %313, %312 : vector<8x128xf32>
    %315 = arith.divf %313, %314 : vector<8x128xf32>
    %316 = vector.extract_strided_slice %315 {offsets = [0, 0], sizes = [8, 32], strides = [1, 1]} : vector<8x128xf32> to vector<8x32xf32>
    %317 = vector.extract_strided_slice %315 {offsets = [0, 32], sizes = [8, 32], strides = [1, 1]} : vector<8x128xf32> to vector<8x32xf32>
    %318 = vector.extract_strided_slice %315 {offsets = [0, 96], sizes = [8, 32], strides = [1, 1]} : vector<8x128xf32> to vector<8x32xf32>
    %319 = vector.extract_strided_slice %310 {offsets = [0, 64], sizes = [8, 32], strides = [1, 1]} : vector<8x128xf32> to vector<8x32xf32>
    %320 = math.tanh %319 : vector<8x32xf32>
    %321 = arith.mulf %317, %302 : vector<8x32xf32>
    %322 = arith.mulf %316, %320 : vector<8x32xf32>
    %323 = arith.addf %321, %322 : vector<8x32xf32>
    %324 = math.tanh %323 : vector<8x32xf32>
    %325 = arith.mulf %318, %324 : vector<8x32xf32>
    %c5_i32_122 = arith.constant 5 : i32
    %326 = arith.index_cast %c5_i32_122 : i32 to index
    %c0_123 = arith.constant 0 : index
    %c0_124 = arith.constant 0 : index
    %327 = vector.load %arg11[%326, %c0_123, %c0_124] : memref<8x8x128xf32, #tpu.memory_space<vmem>>, vector<1x8x128xf32>
    %328 = vector.shape_cast %327 : vector<1x8x128xf32> to vector<8x128xf32>
    %c0_125 = arith.constant 0 : index
    %c0_126 = arith.constant 0 : index
    %329 = vector.load %arg5[%c0_125, %c0_126] : memref<32x128xf32, #tpu.memory_space<vmem>>, vector<32x128xf32>
    %cst_127 = arith.constant dense<0.000000e+00> : vector<8x128xf32>
    %330 = tpu.matmul %325, %329, %cst_127 {dimension_numbers = #tpu.dot_dimension_numbers<[1], [0], [0], [1], [0, 0, 1, 1], [], []>} : vector<8x32xf32>, vector<32x128xf32>, vector<8x128xf32> -> vector<8x128xf32>
    %331 = arith.addf %328, %330 : vector<8x128xf32>
    %332 = arith.negf %331 : vector<8x128xf32>
    %333 = math.exp %332 : vector<8x128xf32>
    %cst_128 = arith.constant 1.000000e+00 : f32
    %334 = vector.broadcast %cst_128 : f32 to vector<8x128xf32>
    %335 = arith.addf %334, %333 : vector<8x128xf32>
    %336 = arith.divf %334, %335 : vector<8x128xf32>
    %337 = vector.extract_strided_slice %336 {offsets = [0, 0], sizes = [8, 32], strides = [1, 1]} : vector<8x128xf32> to vector<8x32xf32>
    %338 = vector.extract_strided_slice %336 {offsets = [0, 32], sizes = [8, 32], strides = [1, 1]} : vector<8x128xf32> to vector<8x32xf32>
    %339 = vector.extract_strided_slice %336 {offsets = [0, 96], sizes = [8, 32], strides = [1, 1]} : vector<8x128xf32> to vector<8x32xf32>
    %340 = vector.extract_strided_slice %331 {offsets = [0, 64], sizes = [8, 32], strides = [1, 1]} : vector<8x128xf32> to vector<8x32xf32>
    %341 = math.tanh %340 : vector<8x32xf32>
    %342 = arith.mulf %338, %323 : vector<8x32xf32>
    %343 = arith.mulf %337, %341 : vector<8x32xf32>
    %344 = arith.addf %342, %343 : vector<8x32xf32>
    %345 = math.tanh %344 : vector<8x32xf32>
    %346 = arith.mulf %339, %345 : vector<8x32xf32>
    %c6_i32_129 = arith.constant 6 : i32
    %347 = arith.index_cast %c6_i32_129 : i32 to index
    %c0_130 = arith.constant 0 : index
    %c0_131 = arith.constant 0 : index
    %348 = vector.load %arg11[%347, %c0_130, %c0_131] : memref<8x8x128xf32, #tpu.memory_space<vmem>>, vector<1x8x128xf32>
    %349 = vector.shape_cast %348 : vector<1x8x128xf32> to vector<8x128xf32>
    %c0_132 = arith.constant 0 : index
    %c0_133 = arith.constant 0 : index
    %350 = vector.load %arg5[%c0_132, %c0_133] : memref<32x128xf32, #tpu.memory_space<vmem>>, vector<32x128xf32>
    %cst_134 = arith.constant dense<0.000000e+00> : vector<8x128xf32>
    %351 = tpu.matmul %346, %350, %cst_134 {dimension_numbers = #tpu.dot_dimension_numbers<[1], [0], [0], [1], [0, 0, 1, 1], [], []>} : vector<8x32xf32>, vector<32x128xf32>, vector<8x128xf32> -> vector<8x128xf32>
    %352 = arith.addf %349, %351 : vector<8x128xf32>
    %353 = arith.negf %352 : vector<8x128xf32>
    %354 = math.exp %353 : vector<8x128xf32>
    %cst_135 = arith.constant 1.000000e+00 : f32
    %355 = vector.broadcast %cst_135 : f32 to vector<8x128xf32>
    %356 = arith.addf %355, %354 : vector<8x128xf32>
    %357 = arith.divf %355, %356 : vector<8x128xf32>
    %358 = vector.extract_strided_slice %357 {offsets = [0, 0], sizes = [8, 32], strides = [1, 1]} : vector<8x128xf32> to vector<8x32xf32>
    %359 = vector.extract_strided_slice %357 {offsets = [0, 32], sizes = [8, 32], strides = [1, 1]} : vector<8x128xf32> to vector<8x32xf32>
    %360 = vector.extract_strided_slice %357 {offsets = [0, 96], sizes = [8, 32], strides = [1, 1]} : vector<8x128xf32> to vector<8x32xf32>
    %361 = vector.extract_strided_slice %352 {offsets = [0, 64], sizes = [8, 32], strides = [1, 1]} : vector<8x128xf32> to vector<8x32xf32>
    %362 = math.tanh %361 : vector<8x32xf32>
    %363 = arith.mulf %359, %344 : vector<8x32xf32>
    %364 = arith.mulf %358, %362 : vector<8x32xf32>
    %365 = arith.addf %363, %364 : vector<8x32xf32>
    %366 = math.tanh %365 : vector<8x32xf32>
    %367 = arith.mulf %360, %366 : vector<8x32xf32>
    %c7_i32_136 = arith.constant 7 : i32
    %368 = arith.index_cast %c7_i32_136 : i32 to index
    %c0_137 = arith.constant 0 : index
    %c0_138 = arith.constant 0 : index
    %369 = vector.load %arg11[%368, %c0_137, %c0_138] : memref<8x8x128xf32, #tpu.memory_space<vmem>>, vector<1x8x128xf32>
    %370 = vector.shape_cast %369 : vector<1x8x128xf32> to vector<8x128xf32>
    %c0_139 = arith.constant 0 : index
    %c0_140 = arith.constant 0 : index
    %371 = vector.load %arg5[%c0_139, %c0_140] : memref<32x128xf32, #tpu.memory_space<vmem>>, vector<32x128xf32>
    %cst_141 = arith.constant dense<0.000000e+00> : vector<8x128xf32>
    %372 = tpu.matmul %367, %371, %cst_141 {dimension_numbers = #tpu.dot_dimension_numbers<[1], [0], [0], [1], [0, 0, 1, 1], [], []>} : vector<8x32xf32>, vector<32x128xf32>, vector<8x128xf32> -> vector<8x128xf32>
    %373 = arith.addf %370, %372 : vector<8x128xf32>
    %374 = arith.negf %373 : vector<8x128xf32>
    %375 = math.exp %374 : vector<8x128xf32>
    %cst_142 = arith.constant 1.000000e+00 : f32
    %376 = vector.broadcast %cst_142 : f32 to vector<8x128xf32>
    %377 = arith.addf %376, %375 : vector<8x128xf32>
    %378 = arith.divf %376, %377 : vector<8x128xf32>
    %379 = vector.extract_strided_slice %378 {offsets = [0, 0], sizes = [8, 32], strides = [1, 1]} : vector<8x128xf32> to vector<8x32xf32>
    %380 = vector.extract_strided_slice %378 {offsets = [0, 32], sizes = [8, 32], strides = [1, 1]} : vector<8x128xf32> to vector<8x32xf32>
    %381 = vector.extract_strided_slice %378 {offsets = [0, 96], sizes = [8, 32], strides = [1, 1]} : vector<8x128xf32> to vector<8x32xf32>
    %382 = vector.extract_strided_slice %373 {offsets = [0, 64], sizes = [8, 32], strides = [1, 1]} : vector<8x128xf32> to vector<8x32xf32>
    %383 = math.tanh %382 : vector<8x32xf32>
    %384 = arith.mulf %380, %365 : vector<8x32xf32>
    %385 = arith.mulf %379, %383 : vector<8x32xf32>
    %386 = arith.addf %384, %385 : vector<8x32xf32>
    %387 = math.tanh %386 : vector<8x32xf32>
    %388 = arith.mulf %381, %387 : vector<8x32xf32>
    %c8_i32_143 = arith.constant 8 : i32
    %c0_144 = arith.constant 0 : index
    %c0_145 = arith.constant 0 : index
    %389 = vector.load %arg7[%c0_144, %c0_145] : memref<1x32xf32, #tpu.memory_space<vmem>>, vector<1x32xf32>
    %390 = vector.broadcast %389 : vector<1x32xf32> to vector<8x32xf32>
    %391 = arith.mulf %388, %390 : vector<8x32xf32>
    %cst_146 = arith.constant dense<0.000000e+00> : vector<8xf32>
    %392 = vector.multi_reduction <add>, %391, %cst_146 [1] : vector<8x32xf32> to vector<8xf32>
    %393 = vector.shape_cast %392 : vector<8xf32> to vector<8x1xf32>
    %c0_147 = arith.constant 0 : index
    %c0_148 = arith.constant 0 : index
    %394 = vector.load %arg8[%c0_147, %c0_148] : memref<1x1xf32, #tpu.memory_space<vmem>>, vector<1x1xf32>
    %395 = vector.broadcast %394 : vector<1x1xf32> to vector<8x1xf32>
    %396 = arith.addf %393, %395 : vector<8x1xf32>
    %c0_149 = arith.constant 0 : index
    %c0_150 = arith.constant 0 : index
    %397 = vector.load %arg9[%c0_149, %c0_150] : memref<8x1xf32, #tpu.memory_space<vmem>>, vector<8x1xf32>
    tpu.vector_store %arg9[%c0_149, %c0_150], %396 {strides = array<i32>} : memref<8x1xf32, #tpu.memory_space<vmem>>, vector<8x1xf32>,
    return
  }
}

</mosaic_0001>

<bundles_post_ra>
// kernel: lstm_forward.1
= control target key start
LH: loop header
LB: loop body
LE: loop exit
PB: predicated region body
PF: predicated region fallthrough
CT: control target
= control target key end

     0   :  { %vm51_vm0 = vcmask 130048   ;;  %v2661_v0 = vmov 0.0|0.0   ;;  %vm2662_vm1 = vmmov 0   ;;  %v2663_v4 = vmov 0.0   ;;  %s2664_s25 = smov 64   ;;  %s2666_s11 = smov 96   ;;  %s3064_s1 = inlined_call_operand.vmem [shape: f32[16,128], index: 1, kind: input, shape index: {}]   ;;  %s3065_s2 = inlined_call_operand.vmem [shape: f32[32,128], index: 2, kind: input, shape index: {}]   ;;  %s3066_s0 = inlined_call_operand.vmem [shape: f32[64,16], index: 0, kind: input, shape index: {}]   ;;  %s3067_s3 = inlined_call_operand.vmem [shape: f32[1,128], index: 3, kind: input, shape index: {}]   ;;  %s3068_s4 = inlined_call_operand.vmem [shape: f32[32,128], index: 4, kind: input, shape index: {}]   ;;  %s3069_s5 = inlined_call_operand.vmem [shape: f32[32,128], index: 5, kind: input, shape index: {}]   ;;  %s3070_s6 = inlined_call_operand.vmem [shape: f32[1,128], index: 6, kind: input, shape index: {}]   ;;  %s3071_s7 = inlined_call_operand.vmem [shape: f32[1,32], index: 7, kind: input, shape index: {}]   ;;  %s3072_s8 = inlined_call_operand.<no memory space> [shape: f32[1,1], index: 8, kind: input, shape index: {}]   ;;  %s3073_s9 = inlined_call_operand.vmem [shape: f32[8,1], index: 9, kind: output, shape index: {}]  }
   0x1   :  { %2423 = vmatprep.subr.bf16.mxu1 %v2661_v0  ;;  %v42_v1 = vld [vmem:[%s3064_s1] sm:$0xff]  ;;  %v43_v2 = vld [vmem:[%s3064_s1 + $0x8] sm:$0xff]  ;;  %2231 = vmatprep.mubr.msk.f32.mxu1 %vm2662_vm1, %v2663_v4  ;;  %v192_v9 = vld [vmem:[%s3065_s2 + $0x10] sm:$0xff]  ;;  %vm194_vm2 = vcmask 261120   ;;  %vm2049_vm3 = vcmask 7168  }
   0x2   :  { %v190_v3 = vld [vmem:[%s3065_s2] sm:$0xff]  ;;  %v2419_v5 = vpack.c.bf16 %v43_v2, %v42_v1  ;;  %v191_v6 = vld [vmem:[%s3065_s2 + $0x8] sm:$0xff]  ;;  %v193_v10 = vld [vmem:[%s3065_s2 + $0x18] sm:$0xff] }
   0x3   :  { %v34_v7 = vld [vmem:[%s3066_s0] sm:$0xff]  ;;  %v2735_v8 = vpack.c.bf16 %v191_v6, %v190_v3  ;;  %v35_v11 = vld [vmem:[%s3066_s0 + $0x8] sm:$0xff]  ;;  %v2748_v12 = vpack.c.bf16 %v193_v10, %v192_v9  ;;  %v36_v48 = vld [vmem:[%s3066_s0 + $0x10] sm:$0xff] }
   0x4   :  { %2211 = vmatprep.mubr.msk.f32.mxu0 %vm51_vm0, %v34_v7  ;;  %2420 = vmatprep.subr.bf16.mxu0 %v2419_v5  ;;  %v2769_v13 = vld [vmem:[%s3067_s3] ss:$0 sm:$0xff]  ;;  %s2665_s3 = smov 32   ;;  %v37_v49 = vld [vmem:[%s3066_s0 + $0x18] sm:$0xff]  ;;  %v39_v51 = vld [vmem:[%s3066_s0 + $0x28] sm:$0xff] }
   0x5   :  { %2425 = vmatpush3.bf16.msra.mxu1 %v2735_v8  ;;  %2422 = vmatpush3.bf16.msra.mxu0 %v2419_v5  ;;  %v38_v50 = vld [vmem:[%s3066_s0 + $0x20] sm:$0xff]  ;;  %v40_v52 = vld [vmem:[%s3066_s0 + $0x30] sm:$0xff]  ;;  %v41_v53 = vld [vmem:[%s3066_s0 + $0x38] sm:$0xff] }
   0x6   :  { %2426 = vmatprep.subr.bf16.mxu1 %v2661_v0  ;;  %2435 = vmatprep.subr.bf16.mxu0 %v2661_v0 }
   0x8   :  { %2212 = vmatmul.mubr.msk.f32.vlgmr.msra.gmra.mrb[0].mxu0 %vm51_vm0, %v35_v11 }
   0x9   :  { %2428 = vmatpush3.bf16.msra.mxu1 %v2748_v12  ;;  %2437 = vmatpush3.bf16.msra.mxu0 %v2735_v8 }
   0xa   :  { %2429 = vmatprep.subr.bf16.mxu1 %v2661_v0  ;;  %2438 = vmatprep.subr.bf16.mxu0 %v2661_v0 }
   0xb   :  { %2214 = vmatprep.mubr.msk.f32.mxu0 %vm51_vm0, %v36_v48 }
   0xc   :  { %2232 = vmatmul.mubr.f32.vlgmr.msra.gmra.mrb[0].mxu1 %v2663_v4  ;;  %2215 = vmatmul.mubr.msk.f32.gmra.mrb[2].mxu0 %vm51_vm0, %v37_v49 }
   0xd   :  { %2431 = vmatpush3.bf16.msra.mxu1 %v2735_v8  ;;  %2242 = vmatprep.mubr.msk.f32.mxu1 %vm2662_vm1, %v2663_v4 }
   0xe   :  { %2432 = vmatprep.subr.bf16.mxu1 %v2661_v0  ;;  %2440 = vmatpush3.bf16.msra.mxu0 %v2748_v12 }
   0xf   :  { %2447 = vmatprep.subr.bf16.mxu0 %v2661_v0  ;;  %2217 = vmatprep.mubr.msk.f32.mxu0 %vm51_vm0, %v38_v50 }
  0x10   :  { %2218 = vmatmul.mubr.msk.f32.gmra.mrb[4].mxu0 %vm51_vm0, %v39_v51 }
  0x11   :  { %2434 = vmatpush3.bf16.msra.mxu1 %v2748_v12  ;;  %2220 = vmatprep.mubr.msk.f32.mxu0 %vm51_vm0, %v40_v52 }
  0x12   :  { %2441 = vmatprep.subr.bf16.mxu1 %v2661_v0 }
  0x14   :  { %2221 = vmatmul.mubr.msk.f32.gmra.mrb[6].mxu0 %vm51_vm0, %v41_v53 }
  0x15   :  { %2253 = vmatprep.mubr.msk.f32.mxu0 %vm2662_vm1, %v2663_v4 }
  0xdb   :  { %v2213_v14 = vpop.f32.mrb[0].mxu0 }
  0xdc   :  { %v142_v15 = vpop.f32.mrb[1].mxu0  ;;  %v148_v34 = vadd.f32 %v2213_v14, %v2769_v13 }
  0xdd   :  { %v143_v16 = vadd.f32 %v2769_v13, %v142_v15 }
  0xdf   :  { %v264_v17 = vpop.f32.mrb[0].mxu1  ;;  %v2216_v57 = vpop.f32.mrb[2].mxu0 }
  0xe0   :  { %v268_v18 = vadd.f32 %v264_v17, %v143_v16  ;;  %v2233_v19 = vpop.f32.mrb[1].mxu1  ;;  %v152_v58 = vpop.f32.mrb[3].mxu0 }
  0xe1   :  { %v153_v1 = vadd.f32 %v2769_v13, %v152_v58 }
  0xe2   :  { %2533 = vtanh.f32 %v268_v18  ;;  %v2064_v21 = vmul.f32 -1.442695, %v268_v18 }
  0xe3   :  { %v2815_v59 = vpop.f32.mrb[4].mxu0 }
  0xe4   :  { %2535 = vpow2.f32 %v2064_v21  ;;  %v2817_v60 = vpop.f32.mrb[5].mxu0 }
  0xe7   :  { %v2819_v61 = vpop.f32.mrb[6].mxu0 }
  0xe8   :  { %v2821_v62 = vpop.f32.mrb[7].mxu0 }
  0xec   :  { %v2534_v20 = vpop.eup %2533 }
  0xed   :  { %278 = vrot.lane.b32.xlu0 %v2534_v20, %s2664_s25 }
  0xee   :  { %v2536_v22 = vpop.eup %2535 }
  0xef   :  { %v272_v23 = vadd.f32 1.0, %v2536_v22 }
  0xf1   :  { %2537 = vrcp.f32 %v272_v23  ;;  %v158_v23 = vadd.f32 %v2216_v57, %v2769_v13 }
  0xfb   :  { %v2538_v24 = vpop.eup %2537 }
  0xfc   :  { %v276_v27 = vmul.f32 0.0, %v2538_v24 }
 0x15f   :  { %v279_v25 = vpop.permute.xlu0 %278 }
 0x160   :  { %v281_v26 = vmul.f32 %v2538_v24, %v279_v25 }
 0x162   :  { %283 = vrot.lane.b32.xlu0 %v281_v26, %s2665_s3 }
 0x1d4   :  { %v284_v28 = vpop.permute.xlu0 %283 }
 0x1d5   :  { %v286_v29 = vadd.f32 %v284_v28, %v276_v27 }
 0x1d7   :  { %2539 = vtanh.f32 %v286_v29 }
 0x1e1   :  { %v2540_v30 = vpop.eup %2539 }
 0x1e2   :  { %289 = vrot.lane.b32.xlu1 %v2540_v30, %s2664_s25 }
 0x254   :  { %v290_v31 = vpop.permute.xlu1 %289 }
 0x255   :  { %v292_v32 = vmul.f32 %v2538_v24, %v290_v31 }
 0x257   :  { %294 = vrot.lane.b32.xlu1 %v292_v32, %s2665_s3 }
 0x2c9   :  { %v295_v33 = vpop.permute.xlu1 %294 }
 0x2ca   :  { %297 = vst.msk [vmem:[#allocation2] sm:$0xff] %vm194_vm2, %v295_v33  ;;  %2243 = vmatmul.mubr.msk.f32.vlgmr.msra.gmra.mrb[2].mxu1 %vm194_vm2, %v295_v33 }
 0x2cb   :  { %2443 = vmatpush3.bf16.msra.mxu1 %v2735_v8  ;;  %2264 = vmatprep.mubr.msk.f32.mxu1 %vm2662_vm1, %v2663_v4 }
 0x2cc   :  { %2444 = vmatprep.subr.bf16.mxu1 %v2661_v0 }
 0x2cf   :  { %2446 = vmatpush3.bf16.msra.mxu1 %v2748_v12 }
 0x2d0   :  { %2453 = vmatprep.subr.bf16.mxu1 %v2661_v0 }
 0x39d   :  { %v372_v35 = vpop.f32.mrb[2].mxu1 }
 0x39e   :  { %v376_v36 = vadd.f32 %v372_v35, %v148_v34  ;;  %v2244_v37 = vpop.f32.mrb[3].mxu1 }
 0x3a0   :  { %2541 = vtanh.f32 %v376_v36  ;;  %v2066_v39 = vmul.f32 -1.442695, %v376_v36 }
 0x3a2   :  { %2543 = vpow2.f32 %v2066_v39 }
 0x3aa   :  { %v2542_v38 = vpop.eup %2541 }
 0x3ab   :  { %386 = vrot.lane.b32.xlu0 %v2542_v38, %s2664_s25 }
 0x3ac   :  { %v2544_v40 = vpop.eup %2543 }
 0x3ad   :  { %v380_v41 = vadd.f32 1.0, %v2544_v40 }
 0x3af   :  { %2545 = vrcp.f32 %v380_v41  ;;  %v163_v41 = vadd.f32 %v2769_v13, %v2817_v60  ;;  %v168_v60 = vadd.f32 %v2815_v59, %v2769_v13 }
 0x3b9   :  { %v2546_v42 = vpop.eup %2545 }
 0x3ba   :  { %v384_v45 = vmul.f32 %v2546_v42, %v286_v29 }
 0x41d   :  { %v387_v43 = vpop.permute.xlu0 %386 }
 0x41e   :  { %v389_v44 = vmul.f32 %v2546_v42, %v387_v43 }
 0x420   :  { %391 = vrot.lane.b32.xlu1 %v389_v44, %s2665_s3 }
 0x492   :  { %v392_v46 = vpop.permute.xlu1 %391 }
 0x493   :  { %v394_v47 = vadd.f32 %v392_v46, %v384_v45 }
 0x495   :  { %2547 = vtanh.f32 %v394_v47 }
 0x49f   :  { %v2548_v54 = vpop.eup %2547 }
 0x4a0   :  { %397 = vrot.lane.b32.xlu0 %v2548_v54, %s2664_s25 }
 0x512   :  { %v398_v55 = vpop.permute.xlu0 %397 }
 0x513   :  { %v400_v56 = vmul.f32 %v2546_v42, %v398_v55 }
 0x515   :  { %402 = vrot.lane.b32.xlu1 %v400_v56, %s2665_s3 }
 0x587   :  { %v403_v63 = vpop.permute.xlu1 %402 }
 0x588   :  { %406 = vst.msk [vmem:[#allocation2 + $0x8] sm:$0xff] %vm194_vm2, %v403_v63  ;;  %2254 = vmatmul.mubr.msk.f32.vlgmr.msra.gmra.mrb[8].mxu0 %vm194_vm2, %v403_v63 }
 0x589   :  { %2449 = vmatpush3.bf16.msra.mxu0 %v2735_v8  ;;  %2275 = vmatprep.mubr.msk.f32.mxu0 %vm2662_vm1, %v2663_v4 }
 0x58a   :  { %2450 = vmatprep.subr.bf16.mxu0 %v2661_v0 }
 0x58d   :  { %2452 = vmatpush3.bf16.msra.mxu0 %v2748_v12 }
 0x58e   :  { %2459 = vmatprep.subr.bf16.mxu0 %v2661_v0 }
 0x65b   :  { %v481_v2 = vpop.f32.mrb[8].mxu0 }
 0x65c   :  { %v485_v3 = vadd.f32 %v481_v2, %v153_v1  ;;  %v2255_v5 = vpop.f32.mrb[9].mxu0 }
 0x65e   :  { %2549 = vtanh.f32 %v485_v3  ;;  %v2068_v7 = vmul.f32 -1.442695, %v485_v3 }
 0x660   :  { %2551 = vpow2.f32 %v2068_v7 }
 0x668   :  { %v2550_v6 = vpop.eup %2549 }
 0x669   :  { %495 = vrot.lane.b32.xlu0 %v2550_v6, %s2664_s25 }
 0x66a   :  { %v2552_v9 = vpop.eup %2551 }
 0x66b   :  { %v489_v10 = vadd.f32 1.0, %v2552_v9 }
 0x66d   :  { %2553 = vrcp.f32 %v489_v10 }
 0x677   :  { %v2554_v11 = vpop.eup %2553 }
 0x678   :  { %v493_v16 = vmul.f32 %v2554_v11, %v394_v47 }
 0x6db   :  { %v496_v14 = vpop.permute.xlu0 %495 }
 0x6dc   :  { %v498_v15 = vmul.f32 %v2554_v11, %v496_v14  ;;  %v1069_v14 = vld [vmem:[%s3068_s4] sm:$0xff] }
 0x6de   :  { %500 = vrot.lane.b32.xlu1 %v498_v15, %s2665_s3  ;;  %v1070_v15 = vld [vmem:[%s3068_s4 + $0x8] sm:$0xff] }
 0x750   :  { %v501_v17 = vpop.permute.xlu1 %500 }
 0x751   :  { %v503_v18 = vadd.f32 %v501_v17, %v493_v16  ;;  %v2471_v16 = vpack.c.bf16 %v1070_v15, %v1069_v14 }
 0x753   :  { %2555 = vtanh.f32 %v503_v18 }
 0x75d   :  { %v2556_v19 = vpop.eup %2555 }
 0x75e   :  { %506 = vrot.lane.b32.xlu0 %v2556_v19, %s2664_s25 }
 0x7d0   :  { %v507_v20 = vpop.permute.xlu0 %506 }
 0x7d1   :  { %v509_v21 = vmul.f32 %v2554_v11, %v507_v20  ;;  %v1071_v20 = vld [vmem:[%s3068_s4 + $0x10] sm:$0xff] }
 0x7d3   :  { %511 = vrot.lane.b32.xlu1 %v509_v21, %s2665_s3  ;;  %v1072_v21 = vld [vmem:[%s3068_s4 + $0x18] sm:$0xff] }
 0x845   :  { %v512_v22 = vpop.permute.xlu1 %511 }
 0x846   :  { %515 = vst.msk [vmem:[#allocation2 + $0x10] sm:$0xff] %vm194_vm2, %v512_v22  ;;  %2265 = vmatmul.mubr.msk.f32.vlgmr.msra.gmra.mrb[4].mxu1 %vm194_vm2, %v512_v22  ;;  %v2475_v22 = vpack.c.bf16 %v1072_v21, %v1071_v20 }
 0x847   :  { %2455 = vmatpush3.bf16.msra.mxu1 %v2735_v8  ;;  %2286 = vmatprep.mubr.msk.f32.mxu1 %vm2662_vm1, %v2663_v4 }
 0x848   :  { %2456 = vmatprep.subr.bf16.mxu1 %v2661_v0 }
 0x84b   :  { %2458 = vmatpush3.bf16.msra.mxu1 %v2748_v12 }
 0x84c   :  { %2465 = vmatprep.subr.bf16.mxu1 %v2661_v0 }
 0x919   :  { %v590_v24 = vpop.f32.mrb[4].mxu1 }
 0x91a   :  { %v594_v25 = vadd.f32 %v590_v24, %v158_v23  ;;  %v2266_v26 = vpop.f32.mrb[5].mxu1  ;;  %v1061_v24 = vld [vmem:[#allocation2] sm:$0xff] }
 0x91b   :  { %v1063_v26 = vld [vmem:[#allocation2 + $0x10] sm:$0xff] }
 0x91c   :  { %2557 = vtanh.f32 %v594_v25  ;;  %v2070_v28 = vmul.f32 -1.442695, %v594_v25  ;;  %v1062_v25 = vld [vmem:[#allocation2 + $0x8] sm:$0xff] }
 0x91e   :  { %2559 = vpow2.f32 %v2070_v28 }
 0x926   :  { %v2558_v27 = vpop.eup %2557 }
 0x927   :  { %604 = vrot.lane.b32.xlu0 %v2558_v27, %s2664_s25 }
 0x928   :  { %v2560_v29 = vpop.eup %2559 }
 0x929   :  { %v598_v30 = vadd.f32 1.0, %v2560_v29 }
 0x92b   :  { %2561 = vrcp.f32 %v598_v30  ;;  %v173_v30 = vadd.f32 %v2769_v13, %v2821_v62 }
 0x935   :  { %v2562_v31 = vpop.eup %2561 }
 0x936   :  { %v602_v34 = vmul.f32 %v2562_v31, %v503_v18 }
 0x999   :  { %v605_v32 = vpop.permute.xlu0 %604 }
 0x99a   :  { %v607_v33 = vmul.f32 %v2562_v31, %v605_v32 }
 0x99c   :  { %609 = vrot.lane.b32.xlu1 %v607_v33, %s2665_s3 }
 0xa0e   :  { %v610_v35 = vpop.permute.xlu1 %609 }
 0xa0f   :  { %v612_v36 = vadd.f32 %v610_v35, %v602_v34 }
 0xa11   :  { %2563 = vtanh.f32 %v612_v36 }
 0xa1b   :  { %v2564_v37 = vpop.eup %2563 }
 0xa1c   :  { %615 = vrot.lane.b32.xlu0 %v2564_v37, %s2664_s25 }
 0xa8e   :  { %v616_v38 = vpop.permute.xlu0 %615 }
 0xa8f   :  { %v618_v39 = vmul.f32 %v2562_v31, %v616_v38 }
 0xa91   :  { %620 = vrot.lane.b32.xlu1 %v618_v39, %s2665_s3 }
 0xb03   :  { %v621_v40 = vpop.permute.xlu1 %620 }
 0xb04   :  { %624 = vst.msk [vmem:[#allocation2 + $0x18] sm:$0xff] %vm194_vm2, %v621_v40  ;;  %2276 = vmatmul.mubr.msk.f32.vlgmr.msra.gmra.mrb[10].mxu0 %vm194_vm2, %v621_v40 }
 0xb05   :  { %2461 = vmatpush3.bf16.msra.mxu0 %v2735_v8  ;;  %2297 = vmatprep.mubr.msk.f32.mxu0 %vm2662_vm1, %v2663_v4 }
 0xb06   :  { %2462 = vmatprep.subr.bf16.mxu0 %v2661_v0 }
 0xb09   :  { %2464 = vmatpush3.bf16.msra.mxu0 %v2748_v12 }
 0xb0a   :  { %2472 = vmatprep.subr.bf16.mxu0 %v2471_v16 }
 0xb0b   :  { %v1064_v27 = vld [vmem:[#allocation2 + $0x18] sm:$0xff] }
 0xbd7   :  { %v699_v42 = vpop.f32.mrb[10].mxu0 }
 0xbd8   :  { %v703_v43 = vadd.f32 %v699_v42, %v163_v41  ;;  %v2277_v44 = vpop.f32.mrb[11].mxu0 }
 0xbda   :  { %2565 = vtanh.f32 %v703_v43  ;;  %v2072_v46 = vmul.f32 -1.442695, %v703_v43 }
 0xbdc   :  { %2567 = vpow2.f32 %v2072_v46 }
 0xbe4   :  { %v2566_v45 = vpop.eup %2565 }
 0xbe5   :  { %713 = vrot.lane.b32.xlu0 %v2566_v45, %s2664_s25 }
 0xbe6   :  { %v2568_v47 = vpop.eup %2567 }
 0xbe7   :  { %v707_v48 = vadd.f32 1.0, %v2568_v47 }
 0xbe9   :  { %2569 = vrcp.f32 %v707_v48 }
 0xbf3   :  { %v2570_v49 = vpop.eup %2569 }
 0xbf4   :  { %v711_v52 = vmul.f32 %v2570_v49, %v612_v36 }
 0xc57   :  { %v714_v50 = vpop.permute.xlu0 %713 }
 0xc58   :  { %v716_v51 = vmul.f32 %v2570_v49, %v714_v50  ;;  %v1218_v50 = vld [vmem:[%s3069_s5] sm:$0xff] }
 0xc5a   :  { %718 = vrot.lane.b32.xlu1 %v716_v51, %s2665_s3  ;;  %v1219_v51 = vld [vmem:[%s3069_s5 + $0x8] sm:$0xff] }
 0xccc   :  { %v719_v53 = vpop.permute.xlu1 %718 }
 0xccd   :  { %v721_v54 = vadd.f32 %v719_v53, %v711_v52  ;;  %v2921_v52 = vpack.c.bf16 %v1219_v51, %v1218_v50  ;;  %v1220_v53 = vld [vmem:[%s3069_s5 + $0x10] sm:$0xff] }
 0xccf   :  { %2571 = vtanh.f32 %v721_v54 }
 0xcd9   :  { %v2572_v55 = vpop.eup %2571 }
 0xcda   :  { %724 = vrot.lane.b32.xlu0 %v2572_v55, %s2664_s25 }
 0xd4c   :  { %v725_v56 = vpop.permute.xlu0 %724 }
 0xd4d   :  { %v727_v57 = vmul.f32 %v2570_v49, %v725_v56 }
 0xd4f   :  { %729 = vrot.lane.b32.xlu1 %v727_v57, %s2665_s3 }
 0xdc1   :  { %v730_v58 = vpop.permute.xlu1 %729 }
 0xdc2   :  { %733 = vst.msk [vmem:[#allocation2 + $0x20] sm:$0xff] %vm194_vm2, %v730_v58  ;;  %2287 = vmatmul.mubr.msk.f32.vlgmr.msra.gmra.mrb[6].mxu1 %vm194_vm2, %v730_v58 }
 0xdc3   :  { %2467 = vmatpush3.bf16.msra.mxu1 %v2735_v8  ;;  %2308 = vmatprep.mubr.msk.f32.mxu1 %vm2662_vm1, %v2663_v4 }
 0xdc4   :  { %2468 = vmatprep.subr.bf16.mxu1 %v2661_v0 }
 0xdc7   :  { %2470 = vmatpush3.bf16.msra.mxu1 %v2748_v12 }
 0xdc8   :  { %2479 = vmatprep.subr.bf16.mxu1 %v2661_v0 }
 0xdc9   :  { %v1065_v28 = vld [vmem:[#allocation2 + $0x20] sm:$0xff] }
 0xe95   :  { %v808_v63 = vpop.f32.mrb[6].mxu1 }
 0xe96   :  { %v812_v1 = vadd.f32 %v808_v63, %v168_v60  ;;  %v2288_v2 = vpop.f32.mrb[7].mxu1  ;;  %v178_v63 = vadd.f32 %v2819_v61, %v2769_v13 }
 0xe98   :  { %2573 = vtanh.f32 %v812_v1  ;;  %v2074_v8 = vmul.f32 -1.442695, %v812_v1 }
 0xe9a   :  { %2575 = vpow2.f32 %v2074_v8  ;;  %v2957_v8 = vld [vmem:[%s3070_s6] ss:$0 sm:$0xff] }
 0xea2   :  { %v2574_v3 = vpop.eup %2573 }
 0xea3   :  { %822 = vrot.lane.b32.xlu0 %v2574_v3, %s2664_s25 }
 0xea4   :  { %v2576_v5 = vpop.eup %2575 }
 0xea5   :  { %v816_v6 = vadd.f32 1.0, %v2576_v5 }
 0xea7   :  { %2577 = vrcp.f32 %v816_v6 }
 0xeb1   :  { %v2578_v7 = vpop.eup %2577 }
 0xeb2   :  { %v820_v10 = vmul.f32 %v2578_v7, %v721_v54  ;;  %v1221_v54 = vld [vmem:[%s3069_s5 + $0x18] sm:$0xff] }
 0xeb3   :  { %v2931_v55 = vpack.c.bf16 %v1221_v54, %v1220_v53 }
 0xf15   :  { %v823_v9 = vpop.permute.xlu0 %822 }
 0xf16   :  { %v825_v12 = vmul.f32 %v2578_v7, %v823_v9 }
 0xf18   :  { %827 = vrot.lane.b32.xlu1 %v825_v12, %s2665_s3 }
 0xf8a   :  { %v828_v11 = vpop.permute.xlu1 %827 }
 0xf8b   :  { %v830_v59 = vadd.f32 %v828_v11, %v820_v10 }
 0xf8d   :  { %2579 = vtanh.f32 %v830_v59 }
 0xf97   :  { %v2580_v17 = vpop.eup %2579 }
 0xf98   :  { %833 = vrot.lane.b32.xlu0 %v2580_v17, %s2664_s25 }
0x100a   :  { %v834_v18 = vpop.permute.xlu0 %833 }
0x100b   :  { %v836_v19 = vmul.f32 %v2578_v7, %v834_v18 }
0x100d   :  { %838 = vrot.lane.b32.xlu1 %v836_v19, %s2665_s3 }
0x107f   :  { %v839_v23 = vpop.permute.xlu1 %838 }
0x1080   :  { %842 = vst.msk [vmem:[#allocation2 + $0x28] sm:$0xff] %vm194_vm2, %v839_v23  ;;  %2298 = vmatmul.mubr.msk.f32.vlgmr.msra.gmra.mrb[12].mxu0 %vm194_vm2, %v839_v23 }
0x1081   :  { %2474 = vmatpush3.bf16.msra.mxu0 %v2471_v16  ;;  %2319 = vmatprep.mubr.msk.f32.mxu0 %vm194_vm2, %v1061_v24 }
0x1082   :  { %2476 = vmatprep.subr.bf16.mxu0 %v2475_v22 }
0x1085   :  { %2478 = vmatpush3.bf16.msra.mxu0 %v2475_v22 }
0x1086   :  { %2491 = vmatprep.subr.bf16.mxu0 %v2661_v0 }
0x1087   :  { %v1066_v29 = vld [vmem:[#allocation2 + $0x28] sm:$0xff] }
0x1088   :  { %2320 = vmatmul.mubr.msk.f32.vlgmr.msra.gmra.mrb[14].mxu0 %vm194_vm2, %v1062_v25 }
0x1089   :  { %2322 = vmatprep.mubr.msk.f32.mxu0 %vm194_vm2, %v1063_v26  ;;  %2493 = vmatpush3.bf16.msra.mxu0 %v2921_v52 }
0x108a   :  { %2494 = vmatprep.subr.bf16.mxu0 %v2661_v0 }
0x108c   :  { %2323 = vmatmul.mubr.msk.f32.gmra.mrb[16].mxu0 %vm194_vm2, %v1064_v27 }
0x108d   :  { %2325 = vmatprep.mubr.msk.f32.mxu0 %vm194_vm2, %v1065_v28  ;;  %2496 = vmatpush3.bf16.msra.mxu0 %v2931_v55 }
0x108e   :  { %2503 = vmatprep.subr.bf16.mxu0 %v2661_v0 }
0x1090   :  { %2326 = vmatmul.mubr.msk.f32.gmra.mrb[18].mxu0 %vm194_vm2, %v1066_v29 }
0x1153   :  { %v917_v31 = vpop.f32.mrb[12].mxu0 }
0x1154   :  { %v921_v32 = vadd.f32 %v917_v31, %v173_v30  ;;  %v2299_v33 = vpop.f32.mrb[13].mxu0 }
0x1156   :  { %2581 = vtanh.f32 %v921_v32  ;;  %v2076_v41 = vmul.f32 -1.442695, %v921_v32 }
0x1158   :  { %2583 = vpow2.f32 %v2076_v41 }
0x115b   :  { %v2899_v34 = vpop.f32.mrb[14].mxu0 }
0x115c   :  { %v1170_v35 = vpop.f32.mrb[15].mxu0 }
0x115d   :  { %v1171_v5 = vadd.f32 %v2957_v8, %v1170_v35 }
0x115f   :  { %v2901_v36 = vpop.f32.mrb[16].mxu0 }
0x1160   :  { %v2582_v37 = vpop.eup %2581  ;;  %v2903_v38 = vpop.f32.mrb[17].mxu0 }
0x1161   :  { %931 = vrot.lane.b32.xlu0 %v2582_v37, %s2664_s25  ;;  %v1176_v37 = vadd.f32 %v2899_v34, %v2957_v8 }
0x1162   :  { %v2584_v62 = vpop.eup %2583 }
0x1163   :  { %v2906_v39 = vpop.f32.mrb[18].mxu0  ;;  %v925_v42 = vadd.f32 1.0, %v2584_v62 }
0x1164   :  { %v2908_v40 = vpop.f32.mrb[19].mxu0 }
0x1165   :  { %2585 = vrcp.f32 %v925_v42 }
0x116f   :  { %v2586_v43 = vpop.eup %2585 }
0x1170   :  { %v929_v46 = vmul.f32 %v2586_v43, %v830_v59 }
0x11d3   :  { %v932_v44 = vpop.permute.xlu0 %931 }
0x11d4   :  { %v934_v45 = vmul.f32 %v2586_v43, %v932_v44 }
0x11d6   :  { %936 = vrot.lane.b32.xlu1 %v934_v45, %s2665_s3 }
0x1248   :  { %v937_v47 = vpop.permute.xlu1 %936 }
0x1249   :  { %v2911_v48 = vadd.f32 %v937_v47, %v929_v46 }
0x124b   :  { %2587 = vtanh.f32 %v2911_v48 }
0x1255   :  { %v2588_v49 = vpop.eup %2587 }
0x1256   :  { %942 = vrot.lane.b32.xlu0 %v2588_v49, %s2664_s25 }
0x12c8   :  { %v943_v56 = vpop.permute.xlu0 %942 }
0x12c9   :  { %v945_v57 = vmul.f32 %v2586_v43, %v943_v56 }
0x12cb   :  { %947 = vrot.lane.b32.xlu1 %v945_v57, %s2665_s3 }
0x133d   :  { %v948_v58 = vpop.permute.xlu1 %947 }
0x133e   :  { %951 = vst.msk [vmem:[#allocation2 + $0x30] sm:$0xff] %vm194_vm2, %v948_v58  ;;  %2309 = vmatmul.mubr.msk.f32.vlgmr.msra.gmra.mrb[8].mxu1 %vm194_vm2, %v948_v58 }
0x133f   :  { %2481 = vmatpush3.bf16.msra.mxu1 %v2921_v52  ;;  %2339 = vmatprep.mubr.msk.f32.mxu1 %vm2662_vm1, %v2663_v4 }
0x1340   :  { %2482 = vmatprep.subr.bf16.mxu1 %v2661_v0 }
0x1343   :  { %2484 = vmatpush3.bf16.msra.mxu1 %v2931_v55 }
0x1344   :  { %2485 = vmatprep.subr.bf16.mxu1 %v2661_v0 }
0x1345   :  { %v1067_v60 = vld [vmem:[#allocation2 + $0x30] sm:$0xff] }
0x1346   :  { %2340 = vmatmul.mubr.f32.vlgmr.msra.gmra.mrb[10].mxu1 %v2663_v4  ;;  %2328 = vmatprep.mubr.msk.f32.mxu0 %vm194_vm2, %v1067_v60 }
0x1347   :  { %2487 = vmatpush3.bf16.msra.mxu1 %v2921_v52  ;;  %2350 = vmatprep.mubr.msk.f32.mxu1 %vm2662_vm1, %v2663_v4 }
0x1348   :  { %2488 = vmatprep.subr.bf16.mxu1 %v2661_v0 }
0x134b   :  { %2490 = vmatpush3.bf16.msra.mxu1 %v2931_v55 }
0x134c   :  { %2497 = vmatprep.subr.bf16.mxu1 %v2661_v0 }
0x1411   :  { %v1026_v1 = vpop.f32.mrb[8].mxu1 }
0x1412   :  { %v1030_v2 = vadd.f32 %v1026_v1, %v178_v63  ;;  %v2310_v3 = vpop.f32.mrb[9].mxu1 }
0x1414   :  { %v2078_v20 = vmul.f32 -1.442695, %v1030_v2 }
0x1419   :  { %v1288_v6 = vpop.f32.mrb[10].mxu1 }
0x141a   :  { %v1292_v7 = vadd.f32 %v1288_v6, %v1171_v5  ;;  %v2341_v9 = vpop.f32.mrb[11].mxu1 }
0x141c   :  { %2589 = vtanh.f32 %v1292_v7  ;;  %v2088_v10 = vmul.f32 -1.442695, %v1292_v7 }
0x141e   :  { %2591 = vpow2.f32 %v2088_v10 }
0x1426   :  { %v2590_v12 = vpop.eup %2589 }
0x1427   :  { %1302 = vrot.lane.b32.xlu0 %v2590_v12, %s2664_s25 }
0x1428   :  { %v2592_v13 = vpop.eup %2591 }
0x1429   :  { %v1296_v61 = vadd.f32 1.0, %v2592_v13 }
0x142b   :  { %2593 = vrcp.f32 %v1296_v61 }
0x1435   :  { %v2594_v11 = vpop.eup %2593 }
0x1436   :  { %v1300_v15 = vmul.f32 0.0, %v2594_v11 }
0x1499   :  { %v1303_v59 = vpop.permute.xlu0 %1302 }
0x149a   :  { %v1305_v14 = vmul.f32 %v2594_v11, %v1303_v59 }
0x149c   :  { %1307 = vrot.lane.b32.xlu1 %v1305_v14, %s2665_s3 }
0x150e   :  { %v1308_v16 = vpop.permute.xlu1 %1307 }
0x150f   :  { %v1310_v17 = vadd.f32 %v1308_v16, %v1300_v15 }
0x1511   :  { %2595 = vtanh.f32 %v1310_v17 }
0x1512   :  { %2597 = vtanh.f32 %v1030_v2  ;;  %v1181_v2 = vadd.f32 %v2957_v8, %v2903_v38 }
0x1513   :  { %2599 = vpow2.f32 %v2078_v20 }
0x151b   :  { %v2596_v18 = vpop.eup %2595 }
0x151c   :  { %1313 = vrot.lane.b32.xlu0 %v2596_v18, %s2664_s25  ;;  %v2598_v19 = vpop.eup %2597 }
0x151d   :  { %v2600_v21 = vpop.eup %2599 }
0x151e   :  { %v1034_v22 = vadd.f32 1.0, %v2600_v21 }
0x1520   :  { %1040 = vrot.lane.b32.xlu0 %v2598_v19, %s2664_s25  ;;  %2601 = vrcp.f32 %v1034_v22  ;;  %v1186_v19 = vadd.f32 %v2901_v36, %v2957_v8 }
0x152a   :  { %v2602_v25 = vpop.eup %2601 }
0x152b   :  { %v1038_v29 = vmul.f32 %v2602_v25, %v2911_v48 }
0x158e   :  { %v1314_v23 = vpop.permute.xlu0 %1313 }
0x158f   :  { %v1316_v24 = vmul.f32 %v2594_v11, %v1314_v23 }
0x1591   :  { %1319 = vrot.lane.b32.xlu1 %v1316_v24, %s2665_s3 }
0x1592   :  { %v1041_v26 = vpop.permute.xlu0 %1040 }
0x1593   :  { %v1043_v27 = vmul.f32 %v2602_v25, %v1041_v26 }
0x1595   :  { %1045 = vrot.lane.b32.xlu0 %v1043_v27, %s2665_s3 }
0x1603   :  { %v1320_v28 = vpop.permute.xlu1 %1319 }
0x1604   :  { %2351 = vmatmul.mubr.msk.f32.vlgmr.msra.gmra.mrb[12].mxu1 %vm194_vm2, %v1320_v28 }
0x1605   :  { %2499 = vmatpush3.bf16.msra.mxu1 %v2921_v52  ;;  %2372 = vmatprep.mubr.msk.f32.mxu1 %vm2662_vm1, %v2663_v4 }
0x1606   :  { %2500 = vmatprep.subr.bf16.mxu1 %v2661_v0 }
0x1607   :  { %v1046_v30 = vpop.permute.xlu0 %1045 }
0x1608   :  { %v1048_v31 = vadd.f32 %v1046_v30, %v1038_v29 }
0x1609   :  { %2502 = vmatpush3.bf16.msra.mxu1 %v2931_v55 }
0x160a   :  { %2603 = vtanh.f32 %v1048_v31  ;;  %2509 = vmatprep.subr.bf16.mxu1 %v2661_v0 }
0x1614   :  { %v2604_v32 = vpop.eup %2603 }
0x1615   :  { %1051 = vrot.lane.b32.xlu0 %v2604_v32, %s2664_s25 }
0x1687   :  { %v1052_v33 = vpop.permute.xlu0 %1051 }
0x1688   :  { %v1054_v35 = vmul.f32 %v2602_v25, %v1052_v33 }
0x168a   :  { %1056 = vrot.lane.b32.xlu0 %v1054_v35, %s2665_s3 }
0x16d7   :  { %v1389_v41 = vpop.f32.mrb[12].mxu1 }
0x16d8   :  { %v1393_v62 = vadd.f32 %v1389_v41, %v1176_v37  ;;  %v2352_v42 = vpop.f32.mrb[13].mxu1  ;;  %v1191_v41 = vadd.f32 %v2957_v8, %v2908_v40 }
0x16da   :  { %2605 = vtanh.f32 %v1393_v62  ;;  %v2090_v46 = vmul.f32 -1.442695, %v1393_v62 }
0x16dc   :  { %2607 = vpow2.f32 %v2090_v46 }
0x16e4   :  { %v2606_v43 = vpop.eup %2605 }
0x16e5   :  { %1403 = vrot.lane.b32.xlu1 %v2606_v43, %s2664_s25 }
0x16e6   :  { %v2608_v47 = vpop.eup %2607 }
0x16e7   :  { %v1397_v34 = vadd.f32 1.0, %v2608_v47 }
0x16e9   :  { %2609 = vrcp.f32 %v1397_v34 }
0x16f3   :  { %v2610_v48 = vpop.eup %2609 }
0x16f4   :  { %v1401_v51 = vmul.f32 %v2610_v48, %v1310_v17 }
0x16fc   :  { %v1057_v44 = vpop.permute.xlu0 %1056 }
0x16fd   :  { %1060 = vst.msk [vmem:[#allocation2 + $0x38] sm:$0xff] %vm194_vm2, %v1057_v44 }
0x1704   :  { %v1068_v45 = vld [vmem:[#allocation2 + $0x38] sm:$0xff] }
0x1705   :  { %2329 = vmatmul.mubr.msk.f32.gmra.mrb[20].mxu0 %vm194_vm2, %v1068_v45 }
0x1706   :  { %2361 = vmatprep.mubr.msk.f32.mxu0 %vm2662_vm1, %v2663_v4 }
0x1757   :  { %v1404_v49 = vpop.permute.xlu1 %1403 }
0x1758   :  { %v1406_v50 = vmul.f32 %v2610_v48, %v1404_v49 }
0x175a   :  { %1408 = vrot.lane.b32.xlu1 %v1406_v50, %s2665_s3 }
0x17cc   :  { %v1409_v53 = vpop.permute.xlu1 %1408 }
0x17cd   :  { %v1411_v54 = vadd.f32 %v1409_v53, %v1401_v51 }
0x17cf   :  { %2611 = vtanh.f32 %v1411_v54 }
0x17d8   :  { %v2984_v56 = vpop.f32.mrb[20].mxu0 }
0x17d9   :  { %v2612_v57 = vpop.eup %2611  ;;  %v2986_v58 = vpop.f32.mrb[21].mxu0 }
0x17da   :  { %1414 = vrot.lane.b32.xlu1 %v2612_v57, %s2664_s25 }
0x184c   :  { %v1415_v60 = vpop.permute.xlu1 %1414 }
0x184d   :  { %v1417_v63 = vmul.f32 %v2610_v48, %v1415_v60 }
0x184f   :  { %1420 = vrot.lane.b32.xlu1 %v1417_v63, %s2665_s3  ;;  %v1196_v63 = vadd.f32 %v2906_v39, %v2957_v8 }
0x18c1   :  { %v1421_v1 = vpop.permute.xlu1 %1420 }
0x18c2   :  { %2362 = vmatmul.mubr.msk.f32.vlgmr.msra.gmra.mrb[22].mxu0 %vm194_vm2, %v1421_v1 }
0x18c3   :  { %2505 = vmatpush3.bf16.msra.mxu0 %v2921_v52  ;;  %2383 = vmatprep.mubr.msk.f32.mxu0 %vm2662_vm1, %v2663_v4 }
0x18c4   :  { %2506 = vmatprep.subr.bf16.mxu0 %v2661_v0 }
0x18c7   :  { %2508 = vmatpush3.bf16.msra.mxu0 %v2931_v55 }
0x18c8   :  { %2515 = vmatprep.subr.bf16.mxu0 %v2661_v0 }
0x1995   :  { %v1490_v3 = vpop.f32.mrb[22].mxu0 }
0x1996   :  { %v1494_v5 = vadd.f32 %v1490_v3, %v1181_v2  ;;  %v2363_v6 = vpop.f32.mrb[23].mxu0 }
0x1998   :  { %2613 = vtanh.f32 %v1494_v5  ;;  %v2092_v9 = vmul.f32 -1.442695, %v1494_v5 }
0x199a   :  { %2615 = vpow2.f32 %v2092_v9 }
0x19a2   :  { %v2614_v7 = vpop.eup %2613 }
0x19a3   :  { %1504 = vrot.lane.b32.xlu0 %v2614_v7, %s2664_s25 }
0x19a4   :  { %v2616_v12 = vpop.eup %2615 }
0x19a5   :  { %v1498_v10 = vadd.f32 1.0, %v2616_v12 }
0x19a7   :  { %2617 = vrcp.f32 %v1498_v10 }
0x19b1   :  { %v2618_v13 = vpop.eup %2617 }
0x19b2   :  { %v1502_v59 = vmul.f32 %v2618_v13, %v1411_v54 }
0x1a15   :  { %v1505_v61 = vpop.permute.xlu0 %1504 }
0x1a16   :  { %v1507_v11 = vmul.f32 %v2618_v13, %v1505_v61 }
0x1a18   :  { %1509 = vrot.lane.b32.xlu1 %v1507_v11, %s2665_s3 }
0x1a8a   :  { %v1510_v14 = vpop.permute.xlu1 %1509 }
0x1a8b   :  { %v1512_v38 = vadd.f32 %v1510_v14, %v1502_v59  ;;  %v1201_v59 = vadd.f32 %v2957_v8, %v2986_v58 }
0x1a8d   :  { %2619 = vtanh.f32 %v1512_v38 }
0x1a97   :  { %v2620_v15 = vpop.eup %2619 }
0x1a98   :  { %1515 = vrot.lane.b32.xlu0 %v2620_v15, %s2664_s25 }
0x1b0a   :  { %v1516_v16 = vpop.permute.xlu0 %1515 }
0x1b0b   :  { %v1518_v17 = vmul.f32 %v2618_v13, %v1516_v16 }
0x1b0d   :  { %1521 = vrot.lane.b32.xlu1 %v1518_v17, %s2665_s3 }
0x1b7f   :  { %v1522_v18 = vpop.permute.xlu1 %1521 }
0x1b80   :  { %2373 = vmatmul.mubr.msk.f32.vlgmr.msra.gmra.mrb[14].mxu1 %vm194_vm2, %v1522_v18 }
0x1b81   :  { %2511 = vmatpush3.bf16.msra.mxu1 %v2921_v52  ;;  %2394 = vmatprep.mubr.msk.f32.mxu1 %vm2662_vm1, %v2663_v4 }
0x1b82   :  { %2512 = vmatprep.subr.bf16.mxu1 %v2661_v0 }
0x1b85   :  { %2514 = vmatpush3.bf16.msra.mxu1 %v2931_v55 }
0x1b86   :  { %2521 = vmatprep.subr.bf16.mxu1 %v2661_v0 }
0x1c53   :  { %v1591_v20 = vpop.f32.mrb[14].mxu1 }
0x1c54   :  { %v1595_v21 = vadd.f32 %v1591_v20, %v1186_v19  ;;  %v2374_v22 = vpop.f32.mrb[15].mxu1 }
0x1c56   :  { %2621 = vtanh.f32 %v1595_v21  ;;  %v2094_v24 = vmul.f32 -1.442695, %v1595_v21 }
0x1c58   :  { %2623 = vpow2.f32 %v2094_v24 }
0x1c60   :  { %v2622_v23 = vpop.eup %2621 }
0x1c61   :  { %1605 = vrot.lane.b32.xlu0 %v2622_v23, %s2664_s25 }
0x1c62   :  { %v2624_v25 = vpop.eup %2623 }
0x1c63   :  { %v1599_v26 = vadd.f32 1.0, %v2624_v25 }
0x1c65   :  { %2625 = vrcp.f32 %v1599_v26 }
0x1c6f   :  { %v2626_v27 = vpop.eup %2625 }
0x1c70   :  { %v1603_v30 = vmul.f32 %v2626_v27, %v1512_v38 }
0x1cd3   :  { %v1606_v28 = vpop.permute.xlu0 %1605 }
0x1cd4   :  { %v1608_v29 = vmul.f32 %v2626_v27, %v1606_v28 }
0x1cd6   :  { %1610 = vrot.lane.b32.xlu1 %v1608_v29, %s2665_s3  ;;  %v1206_v29 = vadd.f32 %v2984_v56, %v2957_v8  ;;  %v2103_v8 = vld [vmem:[%s3071_s7] ss:$0 sm:$0xff] }
0x1d48   :  { %v1611_v31 = vpop.permute.xlu1 %1610 }
0x1d49   :  { %v1613_v36 = vadd.f32 %v1611_v31, %v1603_v30 }
0x1d4b   :  { %2627 = vtanh.f32 %v1613_v36 }
0x1d55   :  { %v2628_v32 = vpop.eup %2627 }
0x1d56   :  { %1616 = vrot.lane.b32.xlu0 %v2628_v32, %s2664_s25 }
0x1dc8   :  { %v1617_v33 = vpop.permute.xlu0 %1616 }
0x1dc9   :  { %v1619_v35 = vmul.f32 %v2626_v27, %v1617_v33 }
0x1dcb   :  { %1622 = vrot.lane.b32.xlu1 %v1619_v35, %s2665_s3 }
0x1e3d   :  { %v1623_v37 = vpop.permute.xlu1 %1622 }
0x1e3e   :  { %2384 = vmatmul.mubr.msk.f32.vlgmr.msra.gmra.mrb[24].mxu0 %vm194_vm2, %v1623_v37 }
0x1e3f   :  { %2517 = vmatpush3.bf16.msra.mxu0 %v2921_v52  ;;  %2405 = vmatprep.mubr.msk.f32.mxu0 %vm2662_vm1, %v2663_v4 }
0x1e40   :  { %2518 = vmatprep.subr.bf16.mxu0 %v2661_v0 }
0x1e43   :  { %2520 = vmatpush3.bf16.msra.mxu0 %v2931_v55 }
0x1f11   :  { %v1692_v62 = vpop.f32.mrb[24].mxu0 }
0x1f12   :  { %v1696_v42 = vadd.f32 %v1692_v62, %v1191_v41  ;;  %v2385_v43 = vpop.f32.mrb[25].mxu0 }
0x1f14   :  { %2629 = vtanh.f32 %v1696_v42  ;;  %v2096_v45 = vmul.f32 -1.442695, %v1696_v42 }
0x1f16   :  { %2631 = vpow2.f32 %v2096_v45 }
0x1f1e   :  { %v2630_v44 = vpop.eup %2629 }
0x1f1f   :  { %1706 = vrot.lane.b32.xlu0 %v2630_v44, %s2664_s25 }
0x1f20   :  { %v2632_v46 = vpop.eup %2631 }
0x1f21   :  { %v1700_v47 = vadd.f32 1.0, %v2632_v46  ;;  %v14_v46 = vstv %s3072_s8 }
0x1f22   :  { %15 = vst [vmem:[#allocation4] sm:$0x1] %v14_v46 }
0x1f23   :  { %2633 = vrcp.f32 %v1700_v47 }
0x1f2d   :  { %v2634_v34 = vpop.eup %2633 }
0x1f2e   :  { %v1704_v50 = vmul.f32 %v2634_v34, %v1613_v36 }
0x1f91   :  { %v1707_v48 = vpop.permute.xlu0 %1706 }
0x1f92   :  { %v1709_v49 = vmul.f32 %v2634_v34, %v1707_v48 }
0x1f94   :  { %1711 = vrot.lane.b32.xlu1 %v1709_v49, %s2665_s3 }
0x2006   :  { %v1712_v51 = vpop.permute.xlu1 %1711 }
0x2007   :  { %v1714_v40 = vadd.f32 %v1712_v51, %v1704_v50 }
0x2009   :  { %2635 = vtanh.f32 %v1714_v40 }
0x2013   :  { %v2636_v53 = vpop.eup %2635 }
0x2014   :  { %1717 = vrot.lane.b32.xlu0 %v2636_v53, %s2664_s25 }
0x2086   :  { %v1718_v54 = vpop.permute.xlu0 %1717 }
0x2087   :  { %v1720_v57 = vmul.f32 %v2634_v34, %v1718_v54 }
0x2089   :  { %1723 = vrot.lane.b32.xlu1 %v1720_v57, %s2665_s3 }
0x20fb   :  { %v1724_v60 = vpop.permute.xlu1 %1723 }
0x20fc   :  { %2395 = vmatmul.mubr.msk.f32.vlgmr.msra.gmra.mrb[16].mxu1 %vm194_vm2, %v1724_v60 }
0x20fd   :  { %2523 = vmatpush3.bf16.msra.mxu1 %v2921_v52  ;;  %2416 = vmatprep.mubr.msk.f32.mxu1 %vm2662_vm1, %v2663_v4 }
0x20fe   :  { %2524 = vmatprep.subr.bf16.mxu1 %v2661_v0 }
0x2101   :  { %2526 = vmatpush3.bf16.msra.mxu1 %v2931_v55 }
0x21cf   :  { %v1793_v1 = vpop.f32.mrb[16].mxu1 }
0x21d0   :  { %v1797_v2 = vadd.f32 %v1793_v1, %v1196_v63  ;;  %v2396_v3 = vpop.f32.mrb[17].mxu1 }
0x21d2   :  { %2637 = vtanh.f32 %v1797_v2  ;;  %v2098_v6 = vmul.f32 -1.442695, %v1797_v2 }
0x21d4   :  { %2639 = vpow2.f32 %v2098_v6 }
0x21dc   :  { %v2638_v5 = vpop.eup %2637 }
0x21dd   :  { %1807 = vrot.lane.b32.xlu0 %v2638_v5, %s2664_s25 }
0x21de   :  { %v2640_v52 = vpop.eup %2639 }
0x21df   :  { %v1801_v7 = vadd.f32 1.0, %v2640_v52 }
0x21e1   :  { %2641 = vrcp.f32 %v1801_v7 }
0x21eb   :  { %v2642_v4 = vpop.eup %2641 }
0x21ec   :  { %v1805_v55 = vmul.f32 %v2642_v4, %v1714_v40  ;;  %v2104_v40 = vld [vmem:[#allocation4] ss:$0 sm:$0xff] }
0x224f   :  { %v1808_v9 = vpop.permute.xlu0 %1807 }
0x2250   :  { %v1810_v0 = vmul.f32 %v2642_v4, %v1808_v9 }
0x2252   :  { %1812 = vrot.lane.b32.xlu1 %v1810_v0, %s2665_s3 }
0x22c4   :  { %v1813_v12 = vpop.permute.xlu1 %1812 }
0x22c5   :  { %v1815_v39 = vadd.f32 %v1813_v12, %v1805_v55 }
0x22c7   :  { %2643 = vtanh.f32 %v1815_v39 }
0x22d1   :  { %v2644_v10 = vpop.eup %2643 }
0x22d2   :  { %1818 = vrot.lane.b32.xlu0 %v2644_v10, %s2664_s25 }
0x2344   :  { %v1819_v13 = vpop.permute.xlu0 %1818 }
0x2345   :  { %v1821_v61 = vmul.f32 %v2642_v4, %v1819_v13 }
0x2347   :  { %1824 = vrot.lane.b32.xlu1 %v1821_v61, %s2665_s3 }
0x23b9   :  { %v1825_v11 = vpop.permute.xlu1 %1824 }
0x23ba   :  { %2406 = vmatmul.mubr.msk.f32.vlgmr.msra.gmra.mrb[26].mxu0 %vm194_vm2, %v1825_v11 }
0x248d   :  { %v1894_v14 = vpop.f32.mrb[26].mxu0 }
0x248e   :  { %v1898_v38 = vadd.f32 %v1894_v14, %v1201_v59  ;;  %v2407_v15 = vpop.f32.mrb[27].mxu0 }
0x2490   :  { %2645 = vtanh.f32 %v1898_v38  ;;  %v2100_v17 = vmul.f32 -1.442695, %v1898_v38 }
0x2492   :  { %2647 = vpow2.f32 %v2100_v17 }
0x249a   :  { %v2646_v16 = vpop.eup %2645 }
0x249b   :  { %1908 = vrot.lane.b32.xlu0 %v2646_v16, %s2664_s25 }
0x249c   :  { %v2648_v18 = vpop.eup %2647 }
0x249d   :  { %v1902_v19 = vadd.f32 1.0, %v2648_v18 }
0x249f   :  { %2649 = vrcp.f32 %v1902_v19 }
0x24a9   :  { %v2650_v20 = vpop.eup %2649 }
0x24aa   :  { %v1906_v23 = vmul.f32 %v2650_v20, %v1815_v39 }
0x250d   :  { %v1909_v21 = vpop.permute.xlu0 %1908 }
0x250e   :  { %v1911_v22 = vmul.f32 %v2650_v20, %v1909_v21 }
0x2510   :  { %1913 = vrot.lane.b32.xlu1 %v1911_v22, %s2665_s3 }
0x2582   :  { %v1914_v24 = vpop.permute.xlu1 %1913 }
0x2583   :  { %v1916_v58 = vadd.f32 %v1914_v24, %v1906_v23 }
0x2585   :  { %2651 = vtanh.f32 %v1916_v58 }
0x258f   :  { %v2652_v25 = vpop.eup %2651 }
0x2590   :  { %1919 = vrot.lane.b32.xlu0 %v2652_v25, %s2664_s25 }
0x2602   :  { %v1920_v26 = vpop.permute.xlu0 %1919 }
0x2603   :  { %v1922_v27 = vmul.f32 %v2650_v20, %v1920_v26 }
0x2605   :  { %1925 = vrot.lane.b32.xlu1 %v1922_v27, %s2665_s3 }
0x2677   :  { %v1926_v28 = vpop.permute.xlu1 %1925 }
0x2678   :  { %2417 = vmatmul.mubr.msk.f32.vlgmr.msra.gmra.mrb[18].mxu1 %vm194_vm2, %v1926_v28 }
0x274b   :  { %v1995_v30 = vpop.f32.mrb[18].mxu1 }
0x274c   :  { %v1999_v31 = vadd.f32 %v1995_v30, %v1206_v29  ;;  %v2418_v36 = vpop.f32.mrb[19].mxu1 }
0x274e   :  { %2653 = vtanh.f32 %v1999_v31  ;;  %v2102_v33 = vmul.f32 -1.442695, %v1999_v31 }
0x2750   :  { %2655 = vpow2.f32 %v2102_v33 }
0x2758   :  { %v2654_v32 = vpop.eup %2653 }
0x2759   :  { %2009 = vrot.lane.b32.xlu0 %v2654_v32, %s2664_s25 }
0x275a   :  { %v2656_v35 = vpop.eup %2655 }
0x275b   :  { %v2003_v37 = vadd.f32 1.0, %v2656_v35 }
0x275d   :  { %2657 = vrcp.f32 %v2003_v37 }
0x2767   :  { %v2658_v41 = vpop.eup %2657 }
0x2768   :  { %v2007_v56 = vmul.f32 %v2658_v41, %v1916_v58 }
0x27cb   :  { %v2010_v62 = vpop.permute.xlu0 %2009 }
0x27cc   :  { %v2012_v42 = vmul.f32 %v2658_v41, %v2010_v62 }
0x27ce   :  { %2014 = vrot.lane.b32.xlu1 %v2012_v42, %s2665_s3 }
0x27d2   :  { %2030 = vrot.lane.b32.xlu1 %v2103_v8, %s2666_s11 }
0x2840   :  { %v2015_v43 = vpop.permute.xlu1 %2014 }
0x2841   :  { %v2017_v44 = vadd.f32 %v2015_v43, %v2007_v56 }
0x2843   :  { %2659 = vtanh.f32 %v2017_v44 }
0x2844   :  { %v2031_v34 = vpop.permute.xlu1 %2030 }
0x284d   :  { %v2660_v45 = vpop.eup %2659 }
0x284e   :  { %2020 = vrot.lane.b32.xlu0 %v2660_v45, %s2664_s25 }
0x28c0   :  { %v2021_v47 = vpop.permute.xlu0 %2020 }
0x28c1   :  { %v2023_v48 = vmul.f32 %v2658_v41, %v2021_v47 }
0x28c3   :  { %v2033_v49 = vmul.f32 %v2031_v34, %v2023_v48 }
0x28c5   :  { %2035 = vrot.lane.b32.xlu0 %v2033_v49, %s2665_s3 }
0x2937   :  { %v2036_v50 = vpop.permute.xlu0 %2035 }
0x2938   :  { %v2038_v51 = vsel %vm194_vm2, %v2036_v50, 0.0 }
0x2939   :  { %2039 = vadd.xlane.f32.xlu1 %v2038_v51 }
0x29c6   :  { %v2040_v53 = vpop.xlane.xlu1 %2039 }
0x29c7   :  { %v2048_v54 = vadd.f32 %v2104_v40, %v2040_v53 }
0x29c9   :  { %2050 = vst.msk [vmem:[%s3073_s9] sm:$0xff] %vm2049_vm3, %v2048_v54 }

</bundles_post_ra>
